<compile_context>
chip_gen: v6e
topology: v6e:2x2x1
jax: 0.10.0
libtpu: 0.0.40
codegen_flags: <defaults>
</compile_context>

<pallas_src>
import jax
import jax.numpy as jnp
from jax import lax
from jax.experimental import pallas as pl
from jax.experimental.pallas import tpu as pltpu


# ---------------------------------------------------------------------------
# Kernel
# ---------------------------------------------------------------------------
def _coor_embedding_kernel(coors_t_ref, wxt_ref, wyt_ref, out_ref):
    # coors_t_ref: (C, TN) f32        channel 0 = kx idx, 1 = ky idx, 2: extra
    # wxt_ref:     (E, NX) table dtype  x embedding table, transposed
    # wyt_ref:     (E, NY) table dtype  y embedding table, transposed
    # out_ref:     (2E + C - 2, TN) f32
    coors_t = coors_t_ref[...]
    _, tn = coors_t.shape
    e, nx = wxt_ref.shape
    _, ny = wyt_ref.shape

    # torch .long() truncates toward zero; astype(int32) matches for the
    # non-negative integer index values an Embedding accepts.
    idx = coors_t[0:2, :].astype(jnp.int32)
    ix = idx[0:1, :]                                   # (1, TN)
    iy = idx[1:2, :]                                   # (1, TN)

    # One-hot gather via MXU matmul, built directly in transposed (NUM, TN)
    # form so no cross-lane transpose is ever needed.  Build the sublane iota
    # ONCE and reuse it for both compares (the VALU / vreg work of a second
    # (NUM, TN) iota materialization is the binding cost of this kernel).
    num_max = max(nx, ny)
    iota = lax.broadcasted_iota(jnp.int32, (num_max, tn), 0)   # (NUM_MAX, TN)
    onehot_x = (iota[:nx] == ix).astype(wxt_ref.dtype)         # (NX, TN)
    onehot_y = (iota[:ny] == iy).astype(wyt_ref.dtype)         # (NY, TN)

    kx_emb = jnp.dot(wxt_ref[...], onehot_x,
                     preferred_element_type=jnp.float32)       # (E, TN)
    ky_emb = jnp.dot(wyt_ref[...], onehot_y,
                     preferred_element_type=jnp.float32)       # (E, TN)

    # Direct, lane-dense segment stores (no concatenate, no temporary).
    out_ref[0:e, :] = kx_emb
    out_ref[e:2 * e, :] = ky_emb
    out_ref[2 * e:, :] = coors_t[2:, :]


# ---------------------------------------------------------------------------
# Tile / grid policy (generation-aware)
# ---------------------------------------------------------------------------
def _num_tensorcores_per_chip():
    """Best-effort TensorCore count per chip from the device kind string."""
    try:
        kind = jax.devices()[0].device_kind.lower()
    except Exception:
        return 1
    if "v5e" in kind or "lite" in kind or "v6" in kind:
        return 1                       # single TensorCore per chip
    if "v7" in kind or "v4" in kind or "v5p" in kind:
        return 2                       # megacore / dual TensorCore
    return 1


def _choose_tile_n(n, requested_tile, num_table_rows):
    """Largest lane-dense tile that (a) gives >= 2 grid steps per TensorCore
    on dual-TC chips and (b) keeps the (NUM, TN) one-hot/iota intermediates
    well under the scoped-VMEM default (binding constraint on v7x)."""
    n_pad128 = pl.cdiv(n, 128) * 128
    tile = min(requested_tile, n_pad128)

    cores = _num_tensorcores_per_chip()
    if cores > 1 and n_pad128 >= cores * 2 * 128:
        tile = min(tile, (n_pad128 // (cores * 2) // 128) * 128)

    # Bound per-table one-hot scratch (~4 B/elem f32) to ~8 MiB so the full
    # intermediates (one-hot + iota, x2 tables) stay far below 32 MiB scoped
    # VMEM even on v7x; not binding for the default NUM=320 tables.
    onehot_budget_bytes = 8 * 1024 * 1024
    if num_table_rows > 0:
        cap = (onehot_budget_bytes // (4 * num_table_rows)) // 128 * 128
        tile = min(tile, max(128, cap))

    return max(128, (tile // 128) * 128)


# ---------------------------------------------------------------------------
# Wrapper
# ---------------------------------------------------------------------------
def coor_embedding_forward(coors_kspace, x_weight, y_weight, *,
                           tile_n=2048, table_dtype=jnp.float32):
    """coors_kspace: (N, C) float32, C >= 2.
    x_weight: (num_x_coords, E), y_weight: (num_y_coords, E).
    Returns (coord_features (N, 2E + C - 2), x_weight, y_weight)."""
    n, c = coors_kspace.shape
    nx, e = x_weight.shape
    ny, _ = y_weight.shape
    assert c >= 2
    # Float32 can represent indices exactly only below 2**24.
    assert nx < (1 << 24) and ny < (1 << 24)
    out_dim = 2 * e + (c - 2)

    tile_n = _choose_tile_n(n, tile_n, max(nx, ny))
    grid_n = pl.cdiv(n, tile_n)
    n_padded = grid_n * tile_n

    # Wrapper-side layout plumbing (cheap XLA ops that fuse with producers/
    # consumers in practice): zero-pad the remainder (index 0 -> padding row)
    # and put samples on the lane axis.  Callers that can accept the
    # (out_dim, N) layout directly should skip the final transpose.
    coors_padded = jnp.pad(coors_kspace.astype(jnp.float32),
                           ((0, n_padded - n), (0, 0)))
    coors_t = coors_padded.T                              # (C, n_padded)
    x_weight_t = x_weight.astype(table_dtype).T           # (E, NX)
    y_weight_t = y_weight.astype(table_dtype).T           # (E, NY)

    out_t = pl.pallas_call(
        _coor_embedding_kernel,
        out_shape=jax.ShapeDtypeStruct((out_dim, n_padded), jnp.float32),
        grid_spec=pltpu.PrefetchScalarGridSpec(
            num_scalar_prefetch=0,
            grid=(grid_n,),
            in_specs=[
                pl.BlockSpec((c, tile_n), lambda i: (0, i)),   # coors tile
                pl.BlockSpec((e, nx), lambda i: (0, 0)),       # x table (resident)
                pl.BlockSpec((e, ny), lambda i: (0, 0)),       # y table (resident)
            ],
            out_specs=pl.BlockSpec((out_dim, tile_n), lambda i: (0, i)),
        ),
        compiler_params=pltpu.CompilerParams(
            dimension_semantics=("parallel",),
        ),
    )(coors_t, x_weight_t, y_weight_t)

    coord_features = out_t.T[:n]                           # (N, out_dim)
    return coord_features, x_weight, y_weight


def init_params(key, num_x_coords, num_y_coords, embedding_dim):
    kx, ky = jax.random.split(key)
    x_w = jax.random.normal(kx, (num_x_coords, embedding_dim), jnp.float32)
    y_w = jax.random.normal(ky, (num_y_coords, embedding_dim), jnp.float32)
    # padding_idx=0: zero out row 0 like nn.Embedding does.
    x_w = x_w.at[0].set(0.0)
    y_w = y_w.at[0].set(0.0)
    return x_w, y_w


if __name__ == "__main__":
    key = jax.random.PRNGKey(0)
    k_param, k_ix, k_iy, k_extra = jax.random.split(key, 4)

    # Module defaults for the tables; non-multiple N exercises the padded tail.
    NUM_X, NUM_Y, EMB = 320, 320, 3
    N, C = 1000, 5  # channels: kx idx, ky idx, 3 extra passthrough features

    x_weight, y_weight = init_params(k_param, NUM_X, NUM_Y, EMB)

    ix = jax.random.randint(k_ix, (N,), 0, NUM_X).astype(jnp.float32)
    iy = jax.random.randint(k_iy, (N,), 0, NUM_Y).astype(jnp.float32)
    extra = jax.random.normal(k_extra, (N, C - 2), jnp.float32)
    coors_kspace = jnp.concatenate([ix[:, None], iy[:, None], extra], axis=1)

    coord_features, wx, wy = coor_embedding_forward(coors_kspace, x_weight, y_weight)
    coord_features = jax.block_until_ready(coord_features)

    # Pure-JAX reference check (exact gather: f32 one-hot matmul).
    ref = jnp.concatenate(
        [x_weight[coors_kspace[:, 0].astype(jnp.int32)],
         y_weight[coors_kspace[:, 1].astype(jnp.int32)],
         coors_kspace[:, 2:]],
        axis=1,
    )
    assert coord_features.shape == (N, 2 * EMB + C - 2)
    assert jnp.allclose(coord_features, ref, atol=1e-5)
    assert wx.shape == (NUM_X, EMB) and wy.shape == (NUM_Y, EMB)

    print("KERNEL_OK")
</pallas_src>

<mosaic_0001>
module attributes {stable_mosaic.version = 11 : i64} {
  func.func @_coor_embedding_kernel(%arg0: i32, %arg1: memref<5x1024xf32, #tpu.memory_space<vmem>>, %arg2: memref<3x320xf32, #tpu.memory_space<vmem>>, %arg3: memref<3x320xf32, #tpu.memory_space<vmem>>, %arg4: memref<9x1024xf32, #tpu.memory_space<vmem>>) attributes {dimension_semantics = [#tpu.dimension_semantics<parallel>], iteration_bounds = array<i64: 1>, scalar_prefetch = 0 : i64, scratch_operands = 0 : i64, tpu.core_type = #tpu.core_type<tc>, window_params = [{transform_indices = @transform_0, window_bounds = array<i64: 5, 1024>}, {pipeline_mode = #tpu.pipeline_mode<synchronous>, transform_indices = @transform_1, window_bounds = array<i64: 3, 320>}, {pipeline_mode = #tpu.pipeline_mode<synchronous>, transform_indices = @transform_2, window_bounds = array<i64: 3, 320>}, {transform_indices = @transform_3, window_bounds = array<i64: 9, 1024>}]} {
    %c0 = arith.constant 0 : index
    %c0_0 = arith.constant 0 : index
    %0 = vector.load %arg1[%c0, %c0_0] : memref<5x1024xf32, #tpu.memory_space<vmem>>, vector<5x1024xf32>
    %1 = vector.extract_strided_slice %0 {offsets = [0, 0], sizes = [2, 1024], strides = [1, 1]} : vector<5x1024xf32> to vector<2x1024xf32>
    %2 = arith.fptosi %1 : vector<2x1024xf32> to vector<2x1024xi32>
    %3 = vector.extract_strided_slice %2 {offsets = [0, 0], sizes = [1, 1024], strides = [1, 1]} : vector<2x1024xi32> to vector<1x1024xi32>
    %4 = vector.extract_strided_slice %2 {offsets = [1, 0], sizes = [1, 1024], strides = [1, 1]} : vector<2x1024xi32> to vector<1x1024xi32>
    %5 = tpu.iota {dimensions = array<i32: 0>} : vector<320x1024xi32>
    %6 = vector.broadcast %3 : vector<1x1024xi32> to vector<320x1024xi32>
    %7 = arith.cmpi eq, %5, %6 : vector<320x1024xi32>
    %8 = arith.extui %7 : vector<320x1024xi1> to vector<320x1024xi32>
    %9 = arith.sitofp %8 : vector<320x1024xi32> to vector<320x1024xf32>
    %10 = vector.broadcast %4 : vector<1x1024xi32> to vector<320x1024xi32>
    %11 = arith.cmpi eq, %5, %10 : vector<320x1024xi32>
    %12 = arith.extui %11 : vector<320x1024xi1> to vector<320x1024xi32>
    %13 = arith.sitofp %12 : vector<320x1024xi32> to vector<320x1024xf32>
    %c0_1 = arith.constant 0 : index
    %c0_2 = arith.constant 0 : index
    %14 = vector.load %arg2[%c0_1, %c0_2] : memref<3x320xf32, #tpu.memory_space<vmem>>, vector<3x320xf32>
    %cst = arith.constant dense<0.000000e+00> : vector<3x1024xf32>
    %15 = tpu.matmul %14, %9, %cst {dimension_numbers = #tpu.dot_dimension_numbers<[1], [0], [0], [1], [0, 0, 1, 1], [], []>} : vector<3x320xf32>, vector<320x1024xf32>, vector<3x1024xf32> -> vector<3x1024xf32>
    %c0_3 = arith.constant 0 : index
    %c0_4 = arith.constant 0 : index
    %16 = vector.load %arg3[%c0_3, %c0_4] : memref<3x320xf32, #tpu.memory_space<vmem>>, vector<3x320xf32>
    %cst_5 = arith.constant dense<0.000000e+00> : vector<3x1024xf32>
    %17 = tpu.matmul %16, %13, %cst_5 {dimension_numbers = #tpu.dot_dimension_numbers<[1], [0], [0], [1], [0, 0, 1, 1], [], []>} : vector<3x320xf32>, vector<320x1024xf32>, vector<3x1024xf32> -> vector<3x1024xf32>
    %c0_6 = arith.constant 0 : index
    %c0_7 = arith.constant 0 : index
    %18 = vector.load %arg4[%c0_6, %c0_7] : memref<9x1024xf32, #tpu.memory_space<vmem>>, vector<3x1024xf32>
    tpu.vector_store %arg4[%c0_6, %c0_7], %15 {strides = array<i32>} : memref<9x1024xf32, #tpu.memory_space<vmem>>, vector<3x1024xf32>,
    %c3 = arith.constant 3 : index
    %c0_8 = arith.constant 0 : index
    %19 = vector.load %arg4[%c3, %c0_8] : memref<9x1024xf32, #tpu.memory_space<vmem>>, vector<3x1024xf32>
    tpu.vector_store %arg4[%c3, %c0_8], %17 {strides = array<i32>} : memref<9x1024xf32, #tpu.memory_space<vmem>>, vector<3x1024xf32>,
    %20 = vector.extract_strided_slice %0 {offsets = [2, 0], sizes = [3, 1024], strides = [1, 1]} : vector<5x1024xf32> to vector<3x1024xf32>
    %c6 = arith.constant 6 : index
    %c0_9 = arith.constant 0 : index
    %21 = vector.load %arg4[%c6, %c0_9] : memref<9x1024xf32, #tpu.memory_space<vmem>>, vector<3x1024xf32>
    tpu.vector_store %arg4[%c6, %c0_9], %20 {strides = array<i32>} : memref<9x1024xf32, #tpu.memory_space<vmem>>, vector<3x1024xf32>,
    return
  }
  func.func @transform_0(%arg0: i32) -> (i32, i32) {
    %c0_i32 = arith.constant 0 : i32
    %c0_i32_0 = arith.constant 0 : i32
    return %c0_i32, %arg0 : i32, i32
  }
  func.func @transform_1(%arg0: i32) -> (i32, i32) {
    %c0_i32 = arith.constant 0 : i32
    %c0_i32_0 = arith.constant 0 : i32
    %c0_i32_1 = arith.constant 0 : i32
    return %c0_i32, %c0_i32_0 : i32, i32
  }
  func.func @transform_2(%arg0: i32) -> (i32, i32) {
    %c0_i32 = arith.constant 0 : i32
    %c0_i32_0 = arith.constant 0 : i32
    %c0_i32_1 = arith.constant 0 : i32
    return %c0_i32, %c0_i32_0 : i32, i32
  }
  func.func @transform_3(%arg0: i32) -> (i32, i32) {
    %c0_i32 = arith.constant 0 : i32
    %c0_i32_0 = arith.constant 0 : i32
    return %c0_i32, %arg0 : i32, i32
  }
}

</mosaic_0001>

<bundles_post_ra>
// kernel: tpu_custom_call.1
= control target key start
LH: loop header
LB: loop body
LE: loop exit
PB: predicated region body
PF: predicated region fallthrough
CT: control target
= control target key end

     0   :  { %8 = vsyncpa [#allocation3], 0  ;;  %s6977_s0 = inlined_call_operand.hbm [shape: f32[5,1024], index: 0, kind: input, shape index: {}]   ;;  %s6978_s1 = inlined_call_operand.hbm [shape: f32[3,320], index: 1, kind: input, shape index: {}]   ;;  %s6979_s2 = inlined_call_operand.hbm [shape: f32[3,320], index: 2, kind: input, shape index: {}]   ;;  %s6980_s3 = inlined_call_operand.hbm [shape: f32[9,1024], index: 3, kind: output, shape index: {}]  }
   0x1   :  { %9 = vsyncpa [#allocation6], 0 }
   0x2   :  { %10 = vsyncpa [#allocation4], 0  ;;  %s4752_s12 = smov [#allocation5]   ;;  %s4753_s14 = smov [#allocation2]  }
   0x3   :  { %s27_s13 = sshll.u32 %s4752_s12, 4  ;;  %s17_s15 = sshll.u32 %s4753_s14, 4  ;;  %s28_s13 = int_to_ptr.vmem [resolvable:$true] %s27_s13  ;;  %s18_s15 = int_to_ptr.vmem [resolvable:$true] %s17_s15 }
   0x4   :  { %s4674_s16 = scalar_lea.vmem %s28_s13, 192  ;;  %p4679_p1 = scmp.lt.s32.totalorder %s28_s13, %s28_s13 }
   0x5   :  { %p4675_p0 = scmp.ne.s32.totalorder %s28_s13, %s4674_s16  ;;  %p4680_p2 = scmp.lt.s32.totalorder %s4674_s16, %s4674_s16 }
   0x7   :  { %p4681_p3 = por %p4680_p2, %p4679_p1 }
   0x9   :  { %p4682_p4 = pnand %p4681_p3, %p4675_p0 }
   0xb   :  { %4685 = shalt.err (!%p4682_p4)
}
   0xc   :  { %30 = dma.hbm_to_vmem [thread:$0]  %s6978_s1, 192, %s28_s13, [#allocation6]  }
   0xd   :  { %s4694_s19 = scalar_lea.vmem %s18_s15, 1024  ;;  %p4699_p6 = scmp.lt.s32.totalorder %s18_s15, %s18_s15 }
   0xe   :  { %p4695_p5 = scmp.ne.s32.totalorder %s18_s15, %s4694_s19  ;;  %p4700_p7 = scmp.lt.s32.totalorder %s4694_s19, %s4694_s19 }
  0x10   :  { %p4701_p8 = por %p4700_p7, %p4699_p6 }
  0x12   :  { %p4702_p9 = pnand %p4701_p8, %p4695_p5 }
  0x14   :  { %4705 = shalt.err (!%p4702_p9)
}
  0x15   :  { %20 = dma.hbm_to_vmem [thread:$0]  %s6977_s0, 1024, %s18_s15, [#allocation3]  }
  0x16   :  { %s4754_s22 = smov [#allocation7]  }
  0x17   :  { %s37_s23 = sshll.u32 %s4754_s22, 4  ;;  %s38_s23 = int_to_ptr.vmem [resolvable:$true] %s37_s23 }
  0x18   :  { %s4714_s24 = scalar_lea.vmem %s38_s23, 192  ;;  %p4719_p11 = scmp.lt.s32.totalorder %s38_s23, %s38_s23 }
  0x19   :  { %p4715_p10 = scmp.ne.s32.totalorder %s38_s23, %s4714_s24  ;;  %p4720_p12 = scmp.lt.s32.totalorder %s4714_s24, %s4714_s24 }
  0x1b   :  { %p4721_p13 = por %p4720_p12, %p4719_p11 }
  0x1d   :  { %p4722_p0 = pnand %p4721_p13, %p4715_p10 }
  0x1f   :  { %4725 = shalt.err (!%p4722_p0)
}
  0x20   :  { %40 = dma.hbm_to_vmem [thread:$0]  %s6979_s2, 192, %s38_s23, [#allocation6]  }
  0x21   :  { %4746 = dma.done.wait [#allocation3], 1024  }
  0x22   :  { %4747 = vsyncadd [#allocation3], 4294966272 }
  0x23   :  { %4748 = dma.done.wait [#allocation6], 384  }
  0x24   :  { %4749 = vsyncadd [#allocation6], 4294966912  ;;  %v66_v0 = vlaneseq  ;;  %v4755_v1 = vmov 0.0   ;;  %v51_v3 = vld [vmem:[#allocation2 + $0x8] sm:$0x1f]  ;;  %v4756_v21 = vmov 1.0  }
  0x25   :  { %2235 = vmatprep.mubr.f32.mxu1 %v4755_v1  ;;  %v50_v4 = vld [vmem:[#allocation2] sm:$0x1f]  ;;  %v4632_v5 = vtrunc.f32 %v51_v3  ;;  %v53_v20 = vld [vmem:[#allocation2 + $0x18] sm:$0x1f]  ;;  %v52_v23 = vld [vmem:[#allocation2 + $0x10] sm:$0x1f] }
  0x26   :  { %v4790_v2 = vshrl.u32 %v66_v0, 7  ;;  %v4630_v7 = vtrunc.f32 %v50_v4  ;;  %v4636_v26 = vtrunc.f32 %v53_v20  ;;  %v4634_v28 = vtrunc.f32 %v52_v23  ;;  %v4973_v39 = vld [vmem:[#allocation5 + $0x8] sm:$0x7]  ;;  %v5303_v61 = vld [vmem:[#allocation5] sm:$0x77]  ;;  %s4757_s0 = smov [#allocation8]  }
  0x27   :  { %v4795_v8 = vcvt.f32.s32 %v4632_v5  ;;  %v5325_v62 = vcombine.high %v5303_v61, %v5303_v61  ;;  %v55_v63 = vld [vmem:[#allocation2 + $0x28] sm:$0x1f]  ;;  %v54_v0 = vld [vmem:[#allocation2 + $0x20] sm:$0x1f]  ;;  %v57_v20 = vld [vmem:[#allocation2 + $0x38] sm:$0x1f] }
  0x28   :  { %v4793_v6 = vsub.s32 0, %v4790_v2  ;;  %v4798_v9 = vadd.s32 120, %v4790_v2  ;;  %v4801_v10 = vadd.s32 312, %v4790_v2  ;;  %v4803_v11 = vcvt.f32.s32 %v4630_v7  ;;  %v56_v23 = vld [vmem:[#allocation2 + $0x30] sm:$0x1f]  ;;  %s3329_s2 = sshll.u32 %s4757_s0, 4  ;;  %s3330_s2 = int_to_ptr.vmem [resolvable:$true] %s3329_s2 }
  0x29   :  { %v4806_v12 = vadd.s32 112, %v4790_v2  ;;  %v4809_v13 = vadd.s32 304, %v4790_v2  ;;  %v4820_v16 = vadd.s32 104, %v4790_v2  ;;  %v4823_v17 = vadd.s32 296, %v4790_v2  ;;  %2164 = vmatprep.mubr.f32.mxu0 %v5325_v62  ;;  %s4726_s26 = scalar_lea.vmem %s3330_s2, 2048  ;;  %p4731_p2 = scmp.lt.s32.totalorder %s3330_s2, %s3330_s2 }
  0x2a   :  { %v4813_v14 = vrot.slane %v4795_v8, %v4793_v6  ;;  %v4817_v15 = vrot.slane %v4803_v11, %v4793_v6  ;;  %v4826_v18 = vadd.s32 96, %v4790_v2  ;;  %v4829_v19 = vadd.s32 288, %v4790_v2  ;;  %p4727_p1 = scmp.ne.s32.totalorder %s3330_s2, %s4726_s26  ;;  %p4732_p3 = scmp.lt.s32.totalorder %s4726_s26, %s4726_s26 }
  0x2b   :  { %v4848_v22 = vadd.s32 88, %v4790_v2  ;;  %v4859_v24 = vadd.s32 280, %v4790_v2  ;;  %v4868_v25 = vadd.s32 80, %v4790_v2  ;;  %v4877_v27 = vadd.s32 272, %v4790_v2 }
  0x2c   :  { %vm260_vm0 = vcmp.eq.s32.totalorder %v4798_v9, %v4813_v14  ;;  %vm452_vm1 = vcmp.eq.s32.totalorder %v4801_v10, %v4813_v14  ;;  %vm259_vm2 = vcmp.eq.s32.totalorder %v4798_v9, %v4817_v15  ;;  %vm451_vm3 = vcmp.eq.s32.totalorder %v4801_v10, %v4817_v15  ;;  %p4733_p4 = por %p4732_p3, %p4731_p2 }
  0x2d   :  { %3982 = vmatprep.subr.msk.mxu0 %vm260_vm0, %v4756_v21  ;;  %4046 = vmatprep.subr.msk.mxu1 %vm452_vm1, %v4756_v21  ;;  %vm252_vm4 = vcmp.eq.s32.totalorder %v4806_v12, %v4813_v14  ;;  %vm444_vm5 = vcmp.eq.s32.totalorder %v4809_v13, %v4813_v14  ;;  %vm251_vm6 = vcmp.eq.s32.totalorder %v4806_v12, %v4817_v15  ;;  %v4892_v29 = vadd.s32 72, %v4790_v2 }
  0x2e   :  { %3983 = vmatpush1.msk.msra.mxu0 %vm259_vm2, %v4756_v21  ;;  %4047 = vmatpush1.msk.msra.mxu1 %vm451_vm3, %v4756_v21  ;;  %vm443_vm7 = vcmp.eq.s32.totalorder %v4809_v13, %v4817_v15  ;;  %vm244_vm8 = vcmp.eq.s32.totalorder %v4820_v16, %v4813_v14  ;;  %vm436_vm9 = vcmp.eq.s32.totalorder %v4823_v17, %v4813_v14  ;;  %v4895_v30 = vadd.s32 264, %v4790_v2  ;;  %p4734_p5 = pnand %p4733_p4, %p4727_p1 }
  0x2f   :  { %3984 = vmatprep.subr.msk.mxu0 %vm252_vm4, %v4756_v21  ;;  %4048 = vmatprep.subr.msk.mxu1 %vm444_vm5, %v4756_v21  ;;  %vm243_vm10 = vcmp.eq.s32.totalorder %v4820_v16, %v4817_v15  ;;  %vm435_vm11 = vcmp.eq.s32.totalorder %v4823_v17, %v4817_v15  ;;  %vm236_vm12 = vcmp.eq.s32.totalorder %v4826_v18, %v4813_v14  ;;  %v4904_v31 = vadd.s32 64, %v4790_v2 }
  0x30   :  { %3985 = vmatpush1.msk.msra.mxu0 %vm251_vm6, %v4756_v21  ;;  %4049 = vmatpush1.msk.msra.mxu1 %vm443_vm7, %v4756_v21  ;;  %vm428_vm13 = vcmp.eq.s32.totalorder %v4829_v19, %v4813_v14  ;;  %vm235_vm14 = vcmp.eq.s32.totalorder %v4826_v18, %v4817_v15  ;;  %vm427_vm15 = vcmp.eq.s32.totalorder %v4829_v19, %v4817_v15  ;;  %v4906_v32 = vcvt.f32.s32 %v4636_v26 }
  0x31   :  { %3986 = vmatprep.subr.msk.mxu0 %vm244_vm8, %v4756_v21  ;;  %4050 = vmatprep.subr.msk.mxu1 %vm436_vm9, %v4756_v21  ;;  %vm228_vm0 = vcmp.eq.s32.totalorder %v4848_v22, %v4813_v14  ;;  %vm420_vm1 = vcmp.eq.s32.totalorder %v4859_v24, %v4813_v14  ;;  %vm227_vm2 = vcmp.eq.s32.totalorder %v4848_v22, %v4817_v15  ;;  %v4915_v33 = vadd.s32 256, %v4790_v2 }
  0x32   :  { %3987 = vmatpush1.msk.msra.mxu0 %vm243_vm10, %v4756_v21  ;;  %4051 = vmatpush1.msk.msra.mxu1 %vm435_vm11, %v4756_v21  ;;  %vm419_vm3 = vcmp.eq.s32.totalorder %v4859_v24, %v4817_v15  ;;  %vm220_vm4 = vcmp.eq.s32.totalorder %v4868_v25, %v4813_v14  ;;  %vm412_vm5 = vcmp.eq.s32.totalorder %v4877_v27, %v4813_v14  ;;  %v4917_v34 = vcvt.f32.s32 %v4634_v28 }
  0x33   :  { %3988 = vmatprep.subr.msk.mxu0 %vm236_vm12, %v4756_v21  ;;  %4052 = vmatprep.subr.msk.mxu1 %vm428_vm13, %v4756_v21  ;;  %vm219_vm6 = vcmp.eq.s32.totalorder %v4868_v25, %v4817_v15  ;;  %vm411_vm7 = vcmp.eq.s32.totalorder %v4877_v27, %v4817_v15  ;;  %vm212_vm8 = vcmp.eq.s32.totalorder %v4892_v29, %v4813_v14  ;;  %v4938_v35 = vadd.s32 56, %v4790_v2 }
  0x34   :  { %3989 = vmatpush1.msk.msra.mxu0 %vm235_vm14, %v4756_v21  ;;  %4053 = vmatpush1.msk.msra.mxu1 %vm427_vm15, %v4756_v21  ;;  %vm404_vm9 = vcmp.eq.s32.totalorder %v4895_v30, %v4813_v14  ;;  %vm211_vm10 = vcmp.eq.s32.totalorder %v4892_v29, %v4817_v15  ;;  %vm403_vm11 = vcmp.eq.s32.totalorder %v4895_v30, %v4817_v15  ;;  %v4961_v38 = vadd.s32 48, %v4790_v2 }
  0x35   :  { %3990 = vmatprep.subr.msk.mxu0 %vm228_vm0, %v4756_v21  ;;  %4054 = vmatprep.subr.msk.mxu1 %vm420_vm1, %v4756_v21  ;;  %v4948_v36 = vrot.slane %v4906_v32, %v4793_v6  ;;  %vm204_vm12 = vcmp.eq.s32.totalorder %v4904_v31, %v4813_v14  ;;  %vm396_vm13 = vcmp.eq.s32.totalorder %v4915_v33, %v4813_v14  ;;  %vm2097_vm1 = vcmask 523264  }
  0x36   :  { %3991 = vmatpush1.msk.msra.mxu0 %vm227_vm2, %v4756_v21  ;;  %4055 = vmatpush1.msk.msra.mxu1 %vm419_vm3, %v4756_v21  ;;  %v4958_v37 = vrot.slane %v4917_v34, %v4793_v6  ;;  %vm203_vm14 = vcmp.eq.s32.totalorder %v4904_v31, %v4817_v15  ;;  %vm395_vm15 = vcmp.eq.s32.totalorder %v4915_v33, %v4817_v15  ;;  %v4976_v40 = vadd.s32 40, %v4790_v2 }
  0x37   :  { %3992 = vmatprep.subr.msk.mxu0 %vm220_vm4, %v4756_v21  ;;  %4056 = vmatprep.subr.msk.mxu1 %vm412_vm5, %v4756_v21  ;;  %vm196_vm0 = vcmp.eq.s32.totalorder %v4938_v35, %v4813_v14  ;;  %vm262_vm2 = vcmp.eq.s32.totalorder %v4798_v9, %v4948_v36  ;;  %vm195_vm3 = vcmp.eq.s32.totalorder %v4938_v35, %v4817_v15  ;;  %v4991_v41 = vadd.s32 32, %v4790_v2 }
  0x38   :  { %3993 = vmatpush1.msk.msra.mxu0 %vm219_vm6, %v4756_v21  ;;  %4057 = vmatpush1.msk.msra.mxu1 %vm411_vm7, %v4756_v21  ;;  %vm261_vm4 = vcmp.eq.s32.totalorder %v4798_v9, %v4958_v37  ;;  %vm188_vm5 = vcmp.eq.s32.totalorder %v4961_v38, %v4813_v14  ;;  %vm254_vm6 = vcmp.eq.s32.totalorder %v4806_v12, %v4948_v36  ;;  %v5007_v42 = vadd.s32 24, %v4790_v2 }
  0x39   :  { %3994 = vmatprep.subr.msk.mxu0 %vm212_vm8, %v4756_v21  ;;  %4058 = vmatprep.subr.msk.mxu1 %vm404_vm9, %v4756_v21  ;;  %vm187_vm7 = vcmp.eq.s32.totalorder %v4961_v38, %v4817_v15  ;;  %vm253_vm8 = vcmp.eq.s32.totalorder %v4806_v12, %v4958_v37  ;;  %vm180_vm9 = vcmp.eq.s32.totalorder %v4976_v40, %v4813_v14  ;;  %v5022_v43 = vadd.s32 16, %v4790_v2 }
  0x3a   :  { %3995 = vmatpush1.msk.msra.mxu0 %vm211_vm10, %v4756_v21  ;;  %4059 = vmatpush1.msk.msra.mxu1 %vm403_vm11, %v4756_v21  ;;  %vm246_vm10 = vcmp.eq.s32.totalorder %v4820_v16, %v4948_v36  ;;  %vm179_vm11 = vcmp.eq.s32.totalorder %v4976_v40, %v4817_v15  ;;  %v5037_v44 = vadd.s32 8, %v4790_v2  ;;  %v5064_v45 = vadd.s32 248, %v4790_v2 }
  0x3b   :  { %3996 = vmatprep.subr.msk.mxu0 %vm204_vm12, %v4756_v21  ;;  %4060 = vmatprep.subr.msk.mxu1 %vm396_vm13, %v4756_v21  ;;  %vm245_vm12 = vcmp.eq.s32.totalorder %v4820_v16, %v4958_v37  ;;  %vm172_vm13 = vcmp.eq.s32.totalorder %v4991_v41, %v4813_v14  ;;  %v5079_v46 = vadd.s32 240, %v4790_v2  ;;  %v5094_v47 = vadd.s32 232, %v4790_v2 }
  0x3c   :  { %3997 = vmatpush1.msk.msra.mxu0 %vm203_vm14, %v4756_v21  ;;  %4061 = vmatpush1.msk.msra.mxu1 %vm395_vm15, %v4756_v21  ;;  %vm238_vm14 = vcmp.eq.s32.totalorder %v4826_v18, %v4948_v36  ;;  %vm171_vm15 = vcmp.eq.s32.totalorder %v4991_v41, %v4817_v15  ;;  %v5109_v48 = vadd.s32 224, %v4790_v2  ;;  %v5124_v49 = vadd.s32 216, %v4790_v2 }
  0x3d   :  { %3998 = vmatprep.subr.msk.mxu0 %vm196_vm0, %v4756_v21  ;;  %4062 = vmatmul.mubr.msk.f32.vlgmr.msra.gmra.mxu1 %vm2097_vm1, %v4973_v39  ;;  %vm237_vm0 = vcmp.eq.s32.totalorder %v4826_v18, %v4958_v37  ;;  %v5139_v50 = vadd.s32 208, %v4790_v2  ;;  %v5154_v51 = vadd.s32 200, %v4790_v2  ;;  %v5169_v52 = vadd.s32 192, %v4790_v2 }
  0x3e   :  { %4063 = vmatprep.subr.msk.mxu1 %vm262_vm2, %v4756_v21  ;;  %3999 = vmatpush1.msk.msra.mxu0 %vm195_vm3, %v4756_v21  ;;  %vm164_vm2 = vcmp.eq.s32.totalorder %v5007_v42, %v4813_v14  ;;  %vm230_vm3 = vcmp.eq.s32.totalorder %v4848_v22, %v4948_v36  ;;  %v5184_v53 = vadd.s32 184, %v4790_v2  ;;  %v5199_v54 = vadd.s32 176, %v4790_v2 }
  0x3f   :  { %4064 = vmatpush1.msk.msra.mxu1 %vm261_vm4, %v4756_v21  ;;  %4000 = vmatprep.subr.msk.mxu0 %vm188_vm5, %v4756_v21  ;;  %vm163_vm4 = vcmp.eq.s32.totalorder %v5007_v42, %v4817_v15  ;;  %vm229_vm5 = vcmp.eq.s32.totalorder %v4848_v22, %v4958_v37  ;;  %v5214_v55 = vadd.s32 168, %v4790_v2  ;;  %v5229_v56 = vadd.s32 160, %v4790_v2 }
  0x40   :  { %4065 = vmatprep.subr.msk.mxu1 %vm254_vm6, %v4756_v21  ;;  %4001 = vmatpush1.msk.msra.mxu0 %vm187_vm7, %v4756_v21  ;;  %vm156_vm6 = vcmp.eq.s32.totalorder %v5022_v43, %v4813_v14  ;;  %vm222_vm7 = vcmp.eq.s32.totalorder %v4868_v25, %v4948_v36  ;;  %v5244_v57 = vadd.s32 152, %v4790_v2  ;;  %v5259_v58 = vadd.s32 144, %v4790_v2 }
  0x41   :  { %4066 = vmatpush1.msk.msra.mxu1 %vm253_vm8, %v4756_v21  ;;  %4002 = vmatprep.subr.msk.mxu0 %vm180_vm9, %v4756_v21  ;;  %vm155_vm8 = vcmp.eq.s32.totalorder %v5022_v43, %v4817_v15  ;;  %vm221_vm9 = vcmp.eq.s32.totalorder %v4868_v25, %v4958_v37  ;;  %v5274_v59 = vadd.s32 136, %v4790_v2  ;;  %v5289_v60 = vadd.s32 128, %v4790_v2 }
  0x42   :  { %4067 = vmatprep.subr.msk.mxu1 %vm246_vm10, %v4756_v21  ;;  %4003 = vmatpush1.msk.msra.mxu0 %vm179_vm11, %v4756_v21  ;;  %vm148_vm10 = vcmp.eq.s32.totalorder %v5037_v44, %v4813_v14  ;;  %vm214_vm11 = vcmp.eq.s32.totalorder %v4892_v29, %v4948_v36  ;;  %v4640_v3 = vtrunc.f32 %v55_v63  ;;  %v4638_v4 = vtrunc.f32 %v54_v0 }
  0x43   :  { %4068 = vmatpush1.msk.msra.mxu1 %vm245_vm12, %v4756_v21  ;;  %4004 = vmatprep.subr.msk.mxu0 %vm172_vm13, %v4756_v21  ;;  %vm147_vm12 = vcmp.eq.s32.totalorder %v5037_v44, %v4817_v15  ;;  %vm213_vm13 = vcmp.eq.s32.totalorder %v4892_v29, %v4958_v37  ;;  %v4644_v26 = vtrunc.f32 %v57_v20  ;;  %v4642_v28 = vtrunc.f32 %v56_v23 }
  0x44   :  { %4069 = vmatprep.subr.msk.mxu1 %vm238_vm14, %v4756_v21  ;;  %4005 = vmatpush1.msk.msra.mxu0 %vm171_vm15, %v4756_v21  ;;  %vm140_vm14 = vcmp.eq.s32.totalorder %v4790_v2, %v4813_v14  ;;  %vm206_vm15 = vcmp.eq.s32.totalorder %v4904_v31, %v4948_v36  ;;  %v5395_v5 = vcvt.f32.s32 %v4640_v3  ;;  %v5403_v7 = vcvt.f32.s32 %v4638_v4 }
  0x45   :  { %4070 = vmatpush1.msk.msra.mxu1 %vm237_vm0, %v4756_v21  ;;  %4006 = vmatprep.subr.msk.mxu0 %vm164_vm2, %v4756_v21  ;;  %vm139_vm0 = vcmp.eq.s32.totalorder %v4790_v2, %v4817_v15  ;;  %vm205_vm2 = vcmp.eq.s32.totalorder %v4904_v31, %v4958_v37 }
  0x46   :  { %4071 = vmatprep.subr.msk.mxu1 %vm230_vm3, %v4756_v21  ;;  %4007 = vmatpush1.msk.msra.mxu0 %vm163_vm4, %v4756_v21  ;;  %vm388_vm3 = vcmp.eq.s32.totalorder %v5064_v45, %v4813_v14  ;;  %vm198_vm4 = vcmp.eq.s32.totalorder %v4938_v35, %v4948_v36 }
  0x47   :  { %4072 = vmatpush1.msk.msra.mxu1 %vm229_vm5, %v4756_v21  ;;  %4008 = vmatprep.subr.msk.mxu0 %vm156_vm6, %v4756_v21  ;;  %vm387_vm5 = vcmp.eq.s32.totalorder %v5064_v45, %v4817_v15  ;;  %vm197_vm6 = vcmp.eq.s32.totalorder %v4938_v35, %v4958_v37 }
  0x48   :  { %4073 = vmatprep.subr.msk.mxu1 %vm222_vm7, %v4756_v21  ;;  %4009 = vmatpush1.msk.msra.mxu0 %vm155_vm8, %v4756_v21  ;;  %vm380_vm7 = vcmp.eq.s32.totalorder %v5079_v46, %v4813_v14  ;;  %vm190_vm8 = vcmp.eq.s32.totalorder %v4961_v38, %v4948_v36 }
  0x49   :  { %4074 = vmatpush1.msk.msra.mxu1 %vm221_vm9, %v4756_v21  ;;  %4010 = vmatprep.subr.msk.mxu0 %vm148_vm10, %v4756_v21  ;;  %vm379_vm9 = vcmp.eq.s32.totalorder %v5079_v46, %v4817_v15  ;;  %vm189_vm10 = vcmp.eq.s32.totalorder %v4961_v38, %v4958_v37 }
  0x4a   :  { %4075 = vmatprep.subr.msk.mxu1 %vm214_vm11, %v4756_v21  ;;  %4011 = vmatpush1.msk.msra.mxu0 %vm147_vm12, %v4756_v21  ;;  %vm372_vm11 = vcmp.eq.s32.totalorder %v5094_v47, %v4813_v14  ;;  %vm182_vm12 = vcmp.eq.s32.totalorder %v4976_v40, %v4948_v36 }
  0x4b   :  { %4076 = vmatpush1.msk.msra.mxu1 %vm213_vm13, %v4756_v21  ;;  %4012 = vmatprep.subr.msk.mxu0 %vm140_vm14, %v4756_v21  ;;  %vm371_vm13 = vcmp.eq.s32.totalorder %v5094_v47, %v4817_v15  ;;  %vm181_vm14 = vcmp.eq.s32.totalorder %v4976_v40, %v4958_v37 }
  0x4c   :  { %4077 = vmatprep.subr.msk.mxu1 %vm206_vm15, %v4756_v21  ;;  %4013 = vmatpush1.msk.msra.mxu0 %vm139_vm0, %v4756_v21  ;;  %vm364_vm15 = vcmp.eq.s32.totalorder %v5109_v48, %v4813_v14  ;;  %vm174_vm0 = vcmp.eq.s32.totalorder %v4991_v41, %v4948_v36 }
  0x4d   :  { %4078 = vmatpush1.msk.msra.mxu1 %vm205_vm2, %v4756_v21  ;;  %4014 = vmatprep.subr.msk.mxu0 %vm388_vm3, %v4756_v21  ;;  %vm363_vm2 = vcmp.eq.s32.totalorder %v5109_v48, %v4817_v15  ;;  %vm173_vm3 = vcmp.eq.s32.totalorder %v4991_v41, %v4958_v37 }
  0x4e   :  { %4079 = vmatprep.subr.msk.mxu1 %vm198_vm4, %v4756_v21  ;;  %4015 = vmatpush2.msk.msra.mxu0 %vm387_vm5, %v4756_v21  ;;  %vm356_vm4 = vcmp.eq.s32.totalorder %v5124_v49, %v4813_v14  ;;  %vm166_vm5 = vcmp.eq.s32.totalorder %v5007_v42, %v4948_v36 }
  0x4f   :  { %4080 = vmatpush1.msk.msra.mxu1 %vm197_vm6, %v4756_v21  ;;  %4016 = vmatprep.subr.msk.mxu0 %vm380_vm7, %v4756_v21  ;;  %vm355_vm6 = vcmp.eq.s32.totalorder %v5124_v49, %v4817_v15  ;;  %vm165_vm7 = vcmp.eq.s32.totalorder %v5007_v42, %v4958_v37 }
  0x50   :  { %4081 = vmatprep.subr.msk.mxu1 %vm190_vm8, %v4756_v21  ;;  %4017 = vmatpush2.msk.msra.mxu0 %vm379_vm9, %v4756_v21  ;;  %vm348_vm8 = vcmp.eq.s32.totalorder %v5139_v50, %v4813_v14  ;;  %vm158_vm9 = vcmp.eq.s32.totalorder %v5022_v43, %v4948_v36 }
  0x51   :  { %4082 = vmatpush1.msk.msra.mxu1 %vm189_vm10, %v4756_v21  ;;  %4018 = vmatprep.subr.msk.mxu0 %vm372_vm11, %v4756_v21  ;;  %vm347_vm10 = vcmp.eq.s32.totalorder %v5139_v50, %v4817_v15  ;;  %vm157_vm11 = vcmp.eq.s32.totalorder %v5022_v43, %v4958_v37 }
  0x52   :  { %4083 = vmatprep.subr.msk.mxu1 %vm182_vm12, %v4756_v21  ;;  %4019 = vmatpush2.msk.msra.mxu0 %vm371_vm13, %v4756_v21  ;;  %vm340_vm12 = vcmp.eq.s32.totalorder %v5154_v51, %v4813_v14  ;;  %vm150_vm13 = vcmp.eq.s32.totalorder %v5037_v44, %v4948_v36 }
  0x53   :  { %4084 = vmatpush1.msk.msra.mxu1 %vm181_vm14, %v4756_v21  ;;  %4020 = vmatprep.subr.msk.mxu0 %vm364_vm15, %v4756_v21  ;;  %vm339_vm14 = vcmp.eq.s32.totalorder %v5154_v51, %v4817_v15  ;;  %vm149_vm15 = vcmp.eq.s32.totalorder %v5037_v44, %v4958_v37 }
  0x54   :  { %4085 = vmatprep.subr.msk.mxu1 %vm174_vm0, %v4756_v21  ;;  %4021 = vmatpush2.msk.msra.mxu0 %vm363_vm2, %v4756_v21  ;;  %vm332_vm0 = vcmp.eq.s32.totalorder %v5169_v52, %v4813_v14  ;;  %vm142_vm2 = vcmp.eq.s32.totalorder %v4790_v2, %v4948_v36 }
  0x55   :  { %4086 = vmatpush1.msk.msra.mxu1 %vm173_vm3, %v4756_v21  ;;  %4022 = vmatprep.subr.msk.mxu0 %vm356_vm4, %v4756_v21  ;;  %vm331_vm3 = vcmp.eq.s32.totalorder %v5169_v52, %v4817_v15  ;;  %vm141_vm4 = vcmp.eq.s32.totalorder %v4790_v2, %v4958_v37 }
  0x56   :  { %4087 = vmatprep.subr.msk.mxu1 %vm166_vm5, %v4756_v21  ;;  %4023 = vmatpush2.msk.msra.mxu0 %vm355_vm6, %v4756_v21  ;;  %vm324_vm5 = vcmp.eq.s32.totalorder %v5184_v53, %v4813_v14  ;;  %vm390_vm6 = vcmp.eq.s32.totalorder %v5064_v45, %v4948_v36 }
  0x57   :  { %4088 = vmatpush1.msk.msra.mxu1 %vm165_vm7, %v4756_v21  ;;  %4024 = vmatprep.subr.msk.mxu0 %vm348_vm8, %v4756_v21  ;;  %vm323_vm7 = vcmp.eq.s32.totalorder %v5184_v53, %v4817_v15  ;;  %vm389_vm8 = vcmp.eq.s32.totalorder %v5064_v45, %v4958_v37 }
  0x58   :  { %4089 = vmatprep.subr.msk.mxu1 %vm158_vm9, %v4756_v21  ;;  %4025 = vmatpush2.msk.msra.mxu0 %vm347_vm10, %v4756_v21  ;;  %vm316_vm9 = vcmp.eq.s32.totalorder %v5199_v54, %v4813_v14  ;;  %vm382_vm10 = vcmp.eq.s32.totalorder %v5079_v46, %v4948_v36 }
  0x59   :  { %4090 = vmatpush1.msk.msra.mxu1 %vm157_vm11, %v4756_v21  ;;  %4026 = vmatprep.subr.msk.mxu0 %vm340_vm12, %v4756_v21  ;;  %vm315_vm11 = vcmp.eq.s32.totalorder %v5199_v54, %v4817_v15  ;;  %vm381_vm12 = vcmp.eq.s32.totalorder %v5079_v46, %v4958_v37 }
  0x5a   :  { %4091 = vmatprep.subr.msk.mxu1 %vm150_vm13, %v4756_v21  ;;  %4027 = vmatpush2.msk.msra.mxu0 %vm339_vm14, %v4756_v21  ;;  %vm308_vm13 = vcmp.eq.s32.totalorder %v5214_v55, %v4813_v14  ;;  %vm374_vm14 = vcmp.eq.s32.totalorder %v5094_v47, %v4948_v36 }
  0x5b   :  { %4092 = vmatpush1.msk.msra.mxu1 %vm149_vm15, %v4756_v21  ;;  %4028 = vmatprep.subr.msk.mxu0 %vm332_vm0, %v4756_v21  ;;  %vm307_vm15 = vcmp.eq.s32.totalorder %v5214_v55, %v4817_v15  ;;  %vm373_vm0 = vcmp.eq.s32.totalorder %v5094_v47, %v4958_v37 }
  0x5c   :  { %4093 = vmatprep.subr.msk.mxu1 %vm142_vm2, %v4756_v21  ;;  %4029 = vmatpush2.msk.msra.mxu0 %vm331_vm3, %v4756_v21  ;;  %vm300_vm2 = vcmp.eq.s32.totalorder %v5229_v56, %v4813_v14  ;;  %vm366_vm3 = vcmp.eq.s32.totalorder %v5109_v48, %v4948_v36 }
  0x5d   :  { %4094 = vmatpush1.msk.msra.mxu1 %vm141_vm4, %v4756_v21  ;;  %4030 = vmatprep.subr.msk.mxu0 %vm324_vm5, %v4756_v21  ;;  %vm299_vm4 = vcmp.eq.s32.totalorder %v5229_v56, %v4817_v15  ;;  %vm365_vm5 = vcmp.eq.s32.totalorder %v5109_v48, %v4958_v37 }
  0x5e   :  { %4095 = vmatprep.subr.msk.mxu1 %vm390_vm6, %v4756_v21  ;;  %4031 = vmatpush2.msk.msra.mxu0 %vm323_vm7, %v4756_v21  ;;  %vm292_vm6 = vcmp.eq.s32.totalorder %v5244_v57, %v4813_v14  ;;  %vm358_vm7 = vcmp.eq.s32.totalorder %v5124_v49, %v4948_v36 }
  0x5f   :  { %4096 = vmatpush2.msk.msra.mxu1 %vm389_vm8, %v4756_v21  ;;  %4032 = vmatprep.subr.msk.mxu0 %vm316_vm9, %v4756_v21  ;;  %vm291_vm8 = vcmp.eq.s32.totalorder %v5244_v57, %v4817_v15  ;;  %vm357_vm9 = vcmp.eq.s32.totalorder %v5124_v49, %v4958_v37 }
  0x60   :  { %4097 = vmatprep.subr.msk.mxu1 %vm382_vm10, %v4756_v21  ;;  %4033 = vmatpush2.msk.msra.mxu0 %vm315_vm11, %v4756_v21  ;;  %vm284_vm10 = vcmp.eq.s32.totalorder %v5259_v58, %v4813_v14  ;;  %vm350_vm11 = vcmp.eq.s32.totalorder %v5139_v50, %v4948_v36 }
  0x61   :  { %4098 = vmatpush2.msk.msra.mxu1 %vm381_vm12, %v4756_v21  ;;  %4034 = vmatprep.subr.msk.mxu0 %vm308_vm13, %v4756_v21  ;;  %vm283_vm12 = vcmp.eq.s32.totalorder %v5259_v58, %v4817_v15  ;;  %vm349_vm13 = vcmp.eq.s32.totalorder %v5139_v50, %v4958_v37 }
  0x62   :  { %4099 = vmatprep.subr.msk.mxu1 %vm374_vm14, %v4756_v21  ;;  %4035 = vmatpush2.msk.msra.mxu0 %vm307_vm15, %v4756_v21  ;;  %vm276_vm14 = vcmp.eq.s32.totalorder %v5274_v59, %v4813_v14  ;;  %vm342_vm15 = vcmp.eq.s32.totalorder %v5154_v51, %v4948_v36 }
  0x63   :  { %4100 = vmatpush2.msk.msra.mxu1 %vm373_vm0, %v4756_v21  ;;  %4036 = vmatprep.subr.msk.mxu0 %vm300_vm2, %v4756_v21  ;;  %vm275_vm0 = vcmp.eq.s32.totalorder %v5274_v59, %v4817_v15  ;;  %vm341_vm2 = vcmp.eq.s32.totalorder %v5154_v51, %v4958_v37 }
  0x64   :  { %4101 = vmatprep.subr.msk.mxu1 %vm366_vm3, %v4756_v21  ;;  %4037 = vmatpush2.msk.msra.mxu0 %vm299_vm4, %v4756_v21  ;;  %vm268_vm3 = vcmp.eq.s32.totalorder %v5289_v60, %v4813_v14  ;;  %vm334_vm4 = vcmp.eq.s32.totalorder %v5169_v52, %v4948_v36  ;;  %v5425_v14 = vrot.slane %v5395_v5, %v4793_v6 }
  0x65   :  { %4102 = vmatpush2.msk.msra.mxu1 %vm365_vm5, %v4756_v21  ;;  %4038 = vmatprep.subr.msk.mxu0 %vm292_vm6, %v4756_v21  ;;  %vm267_vm5 = vcmp.eq.s32.totalorder %v5289_v60, %v4817_v15  ;;  %vm333_vm6 = vcmp.eq.s32.totalorder %v5169_v52, %v4958_v37  ;;  %v5435_v15 = vrot.slane %v5403_v7, %v4793_v6 }
  0x66   :  { %4103 = vmatprep.subr.msk.mxu1 %vm358_vm7, %v4756_v21  ;;  %4039 = vmatpush2.msk.msra.mxu0 %vm291_vm8, %v4756_v21  ;;  %vm326_vm7 = vcmp.eq.s32.totalorder %v5184_v53, %v4948_v36  ;;  %vm454_vm8 = vcmp.eq.s32.totalorder %v4801_v10, %v4948_v36 }
  0x67   :  { %4104 = vmatpush2.msk.msra.mxu1 %vm357_vm9, %v4756_v21  ;;  %4040 = vmatprep.subr.msk.mxu0 %vm284_vm10, %v4756_v21  ;;  %vm325_vm9 = vcmp.eq.s32.totalorder %v5184_v53, %v4958_v37  ;;  %vm453_vm10 = vcmp.eq.s32.totalorder %v4801_v10, %v4958_v37 }
  0x68   :  { %4105 = vmatprep.subr.msk.mxu1 %vm350_vm11, %v4756_v21  ;;  %4041 = vmatpush2.msk.msra.mxu0 %vm283_vm12, %v4756_v21  ;;  %vm318_vm11 = vcmp.eq.s32.totalorder %v5199_v54, %v4948_v36  ;;  %vm446_vm12 = vcmp.eq.s32.totalorder %v4809_v13, %v4948_v36 }
  0x69   :  { %4106 = vmatpush2.msk.msra.mxu1 %vm349_vm13, %v4756_v21  ;;  %4042 = vmatprep.subr.msk.mxu0 %vm276_vm14, %v4756_v21  ;;  %vm317_vm13 = vcmp.eq.s32.totalorder %v5199_v54, %v4958_v37  ;;  %vm445_vm14 = vcmp.eq.s32.totalorder %v4809_v13, %v4958_v37 }
  0x6a   :  { %4107 = vmatprep.subr.msk.mxu1 %vm342_vm15, %v4756_v21  ;;  %4043 = vmatpush2.msk.msra.mxu0 %vm275_vm0, %v4756_v21  ;;  %vm310_vm15 = vcmp.eq.s32.totalorder %v5214_v55, %v4948_v36  ;;  %vm438_vm0 = vcmp.eq.s32.totalorder %v4823_v17, %v4948_v36 }
  0x6b   :  { %4108 = vmatpush2.msk.msra.mxu1 %vm341_vm2, %v4756_v21  ;;  %4044 = vmatprep.subr.msk.mxu0 %vm268_vm3, %v4756_v21  ;;  %vm309_vm2 = vcmp.eq.s32.totalorder %v5214_v55, %v4958_v37  ;;  %vm437_vm3 = vcmp.eq.s32.totalorder %v4823_v17, %v4958_v37 }
  0x6c   :  { %4109 = vmatprep.subr.msk.mxu1 %vm334_vm4, %v4756_v21  ;;  %4045 = vmatpush2.msk.msra.mxu0 %vm267_vm5, %v4756_v21  ;;  %vm302_vm4 = vcmp.eq.s32.totalorder %v5229_v56, %v4948_v36  ;;  %vm430_vm5 = vcmp.eq.s32.totalorder %v4829_v19, %v4948_v36 }
  0x6d   :  { %4110 = vmatpush2.msk.msra.mxu1 %vm333_vm6, %v4756_v21  ;;  %2165 = vmatmul.mubr.f32.vlgmr.msra.gmra.mxu0 %v5303_v61  ;;  %vm301_vm6 = vcmp.eq.s32.totalorder %v5229_v56, %v4958_v37 }
  0x6e   :  { %4111 = vmatprep.subr.msk.mxu1 %vm326_vm7, %v4756_v21  ;;  %4127 = vmatprep.subr.msk.mxu0 %vm454_vm8, %v4756_v21  ;;  %vm429_vm7 = vcmp.eq.s32.totalorder %v4829_v19, %v4958_v37  ;;  %vm294_vm8 = vcmp.eq.s32.totalorder %v5244_v57, %v4948_v36 }
  0x6f   :  { %4112 = vmatpush2.msk.msra.mxu1 %vm325_vm9, %v4756_v21  ;;  %4128 = vmatpush1.msk.msra.mxu0 %vm453_vm10, %v4756_v21  ;;  %vm422_vm9 = vcmp.eq.s32.totalorder %v4859_v24, %v4948_v36  ;;  %vm293_vm10 = vcmp.eq.s32.totalorder %v5244_v57, %v4958_v37 }
  0x70   :  { %4113 = vmatprep.subr.msk.mxu1 %vm318_vm11, %v4756_v21  ;;  %4129 = vmatprep.subr.msk.mxu0 %vm446_vm12, %v4756_v21  ;;  %vm421_vm11 = vcmp.eq.s32.totalorder %v4859_v24, %v4958_v37  ;;  %vm286_vm12 = vcmp.eq.s32.totalorder %v5259_v58, %v4948_v36 }
  0x71   :  { %4114 = vmatpush2.msk.msra.mxu1 %vm317_vm13, %v4756_v21  ;;  %4130 = vmatpush1.msk.msra.mxu0 %vm445_vm14, %v4756_v21  ;;  %vm414_vm13 = vcmp.eq.s32.totalorder %v4877_v27, %v4948_v36  ;;  %vm285_vm14 = vcmp.eq.s32.totalorder %v5259_v58, %v4958_v37 }
  0x72   :  { %4115 = vmatprep.subr.msk.mxu1 %vm310_vm15, %v4756_v21  ;;  %4131 = vmatprep.subr.msk.mxu0 %vm438_vm0, %v4756_v21  ;;  %vm413_vm15 = vcmp.eq.s32.totalorder %v4877_v27, %v4958_v37  ;;  %vm278_vm0 = vcmp.eq.s32.totalorder %v5274_v59, %v4948_v36 }
  0x73   :  { %4116 = vmatpush2.msk.msra.mxu1 %vm309_vm2, %v4756_v21  ;;  %4132 = vmatpush1.msk.msra.mxu0 %vm437_vm3, %v4756_v21  ;;  %vm406_vm2 = vcmp.eq.s32.totalorder %v4895_v30, %v4948_v36  ;;  %vm277_vm3 = vcmp.eq.s32.totalorder %v5274_v59, %v4958_v37 }
  0x74   :  { %4117 = vmatprep.subr.msk.mxu1 %vm302_vm4, %v4756_v21  ;;  %4133 = vmatprep.subr.msk.mxu0 %vm430_vm5, %v4756_v21  ;;  %vm405_vm4 = vcmp.eq.s32.totalorder %v4895_v30, %v4958_v37  ;;  %vm270_vm5 = vcmp.eq.s32.totalorder %v5289_v60, %v4948_v36 }
  0x75   :  { %4118 = vmatpush2.msk.msra.mxu1 %vm301_vm6, %v4756_v21  ;;  %4134 = vmatpush1.msk.msra.mxu0 %vm429_vm7, %v4756_v21  ;;  %vm398_vm6 = vcmp.eq.s32.totalorder %v4915_v33, %v4948_v36  ;;  %vm269_vm7 = vcmp.eq.s32.totalorder %v5289_v60, %v4958_v37  ;;  %v5508_v36 = vcvt.f32.s32 %v4644_v26 }
  0x76   :  { %4119 = vmatprep.subr.msk.mxu1 %vm294_vm8, %v4756_v21  ;;  %4135 = vmatprep.subr.msk.mxu0 %vm422_vm9, %v4756_v21  ;;  %vm397_vm8 = vcmp.eq.s32.totalorder %v4915_v33, %v4958_v37  ;;  %vm264_vm9 = vcmp.eq.s32.totalorder %v4798_v9, %v5425_v14  ;;  %v5516_v37 = vcvt.f32.s32 %v4642_v28 }
  0x77   :  { %4120 = vmatpush2.msk.msra.mxu1 %vm293_vm10, %v4756_v21  ;;  %4136 = vmatpush1.msk.msra.mxu0 %vm421_vm11, %v4756_v21  ;;  %vm456_vm10 = vcmp.eq.s32.totalorder %v4801_v10, %v5425_v14  ;;  %vm263_vm11 = vcmp.eq.s32.totalorder %v4798_v9, %v5435_v15  ;;  %v5538_v63 = vrot.slane %v5508_v36, %v4793_v6 }
  0x78   :  { %4121 = vmatprep.subr.msk.mxu1 %vm286_vm12, %v4756_v21  ;;  %4137 = vmatprep.subr.msk.mxu0 %vm414_vm13, %v4756_v21  ;;  %vm455_vm12 = vcmp.eq.s32.totalorder %v4801_v10, %v5435_v15  ;;  %vm256_vm13 = vcmp.eq.s32.totalorder %v4806_v12, %v5425_v14  ;;  %v5548_v0 = vrot.slane %v5516_v37, %v4793_v6  ;;  %v5910_v6 = vsub.s32 1, %v4790_v2 }
  0x79   :  { %4122 = vmatpush2.msk.msra.mxu1 %vm285_vm14, %v4756_v21  ;;  %4138 = vmatpush1.msk.msra.mxu0 %vm413_vm15, %v4756_v21  ;;  %vm448_vm14 = vcmp.eq.s32.totalorder %v4809_v13, %v5425_v14  ;;  %vm255_vm15 = vcmp.eq.s32.totalorder %v4806_v12, %v5435_v15 }
  0x7a   :  { %4123 = vmatprep.subr.msk.mxu1 %vm278_vm0, %v4756_v21  ;;  %4139 = vmatprep.subr.msk.mxu0 %vm406_vm2, %v4756_v21  ;;  %vm447_vm0 = vcmp.eq.s32.totalorder %v4809_v13, %v5435_v15  ;;  %vm248_vm2 = vcmp.eq.s32.totalorder %v4820_v16, %v5425_v14  ;;  %v5948_v3 = vrot.slane %v4803_v11, %v5910_v6 }
  0x7b   :  { %4124 = vmatpush2.msk.msra.mxu1 %vm277_vm3, %v4756_v21  ;;  %4140 = vmatpush1.msk.msra.mxu0 %vm405_vm4, %v4756_v21  ;;  %vm440_vm3 = vcmp.eq.s32.totalorder %v4823_v17, %v5425_v14  ;;  %vm247_vm4 = vcmp.eq.s32.totalorder %v4820_v16, %v5435_v15  ;;  %v6046_v11 = vrot.slane %v4906_v32, %v5910_v6  ;;  %v6066_v32 = vld [vmem:[#allocation7 + $0x8] sm:$0x7] }
  0x7c   :  { %4125 = vmatprep.subr.msk.mxu1 %vm270_vm5, %v4756_v21  ;;  %4141 = vmatprep.subr.msk.mxu0 %vm398_vm6, %v4756_v21  ;;  %vm439_vm5 = vcmp.eq.s32.totalorder %v4823_v17, %v5435_v15  ;;  %vm240_vm6 = vcmp.eq.s32.totalorder %v4826_v18, %v5425_v14  ;;  %v6451_v4 = vrot.slane %v5395_v5, %v5910_v6 }
  0x7d   :  { %4126 = vmatpush2.msk.msra.mxu1 %vm269_vm7, %v4756_v21  ;;  %2306 = vmatprep.mubr.f32.mxu1 %v5325_v62  ;;  %vm432_vm7 = vcmp.eq.s32.totalorder %v4829_v19, %v5425_v14  ;;  %v6560_v28 = vrot.slane %v5508_v36, %v5910_v6 }
  0x7e   :  { %4142 = vmatpush1.msk.msra.mxu0 %vm397_vm8, %v4756_v21  ;;  %2377 = vmatprep.mubr.f32.mxu0 %v4755_v1  ;;  %vm239_vm8 = vcmp.eq.s32.totalorder %v4826_v18, %v5435_v15 }
  0x7f   :  { %2307 = vmatmul.mubr.f32.vlgmr.msra.gmra.mxu1 %v5303_v61  ;;  %4143 = vmatmul.mubr.msk.f32.vlgmr.msra.gmra.mxu0 %vm2097_vm1, %v4973_v39 }
  0x80   :  { %4144 = vmatprep.subr.msk.mxu0 %vm264_vm9, %v4756_v21  ;;  %4208 = vmatprep.subr.msk.mxu1 %vm456_vm10, %v4756_v21  ;;  %vm431_vm9 = vcmp.eq.s32.totalorder %v4829_v19, %v5435_v15  ;;  %vm232_vm10 = vcmp.eq.s32.totalorder %v4848_v22, %v5425_v14 }
  0x81   :  { %4145 = vmatpush1.msk.msra.mxu0 %vm263_vm11, %v4756_v21  ;;  %4209 = vmatpush1.msk.msra.mxu1 %vm455_vm12, %v4756_v21  ;;  %vm424_vm11 = vcmp.eq.s32.totalorder %v4859_v24, %v5425_v14  ;;  %vm231_vm12 = vcmp.eq.s32.totalorder %v4848_v22, %v5435_v15 }
  0x82   :  { %4146 = vmatprep.subr.msk.mxu0 %vm256_vm13, %v4756_v21  ;;  %4210 = vmatprep.subr.msk.mxu1 %vm448_vm14, %v4756_v21  ;;  %vm423_vm13 = vcmp.eq.s32.totalorder %v4859_v24, %v5435_v15  ;;  %vm224_vm14 = vcmp.eq.s32.totalorder %v4868_v25, %v5425_v14 }
  0x83   :  { %4147 = vmatpush1.msk.msra.mxu0 %vm255_vm15, %v4756_v21  ;;  %4211 = vmatpush1.msk.msra.mxu1 %vm447_vm0, %v4756_v21  ;;  %vm416_vm15 = vcmp.eq.s32.totalorder %v4877_v27, %v5425_v14  ;;  %vm223_vm0 = vcmp.eq.s32.totalorder %v4868_v25, %v5435_v15 }
  0x84   :  { %4148 = vmatprep.subr.msk.mxu0 %vm248_vm2, %v4756_v21  ;;  %4212 = vmatprep.subr.msk.mxu1 %vm440_vm3, %v4756_v21  ;;  %vm415_vm2 = vcmp.eq.s32.totalorder %v4877_v27, %v5435_v15  ;;  %vm216_vm3 = vcmp.eq.s32.totalorder %v4892_v29, %v5425_v14 }
  0x85   :  { %4149 = vmatpush1.msk.msra.mxu0 %vm247_vm4, %v4756_v21  ;;  %4213 = vmatpush1.msk.msra.mxu1 %vm439_vm5, %v4756_v21  ;;  %vm408_vm4 = vcmp.eq.s32.totalorder %v4895_v30, %v5425_v14  ;;  %vm215_vm5 = vcmp.eq.s32.totalorder %v4892_v29, %v5435_v15 }
  0x86   :  { %4150 = vmatprep.subr.msk.mxu0 %vm240_vm6, %v4756_v21  ;;  %4214 = vmatprep.subr.msk.mxu1 %vm432_vm7, %v4756_v21  ;;  %vm407_vm6 = vcmp.eq.s32.totalorder %v4895_v30, %v5435_v15  ;;  %vm208_vm7 = vcmp.eq.s32.totalorder %v4904_v31, %v5425_v14 }
  0x87   :  { %4151 = vmatpush1.msk.msra.mxu0 %vm239_vm8, %v4756_v21  ;;  %4215 = vmatpush1.msk.msra.mxu1 %vm431_vm9, %v4756_v21  ;;  %vm400_vm8 = vcmp.eq.s32.totalorder %v4915_v33, %v5425_v14  ;;  %vm207_vm9 = vcmp.eq.s32.totalorder %v4904_v31, %v5435_v15 }
  0x88   :  { %4152 = vmatprep.subr.msk.mxu0 %vm232_vm10, %v4756_v21  ;;  %4216 = vmatprep.subr.msk.mxu1 %vm424_vm11, %v4756_v21  ;;  %vm399_vm10 = vcmp.eq.s32.totalorder %v4915_v33, %v5435_v15  ;;  %vm200_vm11 = vcmp.eq.s32.totalorder %v4938_v35, %v5425_v14 }
  0x89   :  { %4153 = vmatpush1.msk.msra.mxu0 %vm231_vm12, %v4756_v21  ;;  %4217 = vmatpush1.msk.msra.mxu1 %vm423_vm13, %v4756_v21  ;;  %vm266_vm12 = vcmp.eq.s32.totalorder %v4798_v9, %v5538_v63  ;;  %vm199_vm13 = vcmp.eq.s32.totalorder %v4938_v35, %v5435_v15 }
  0x8a   :  { %4154 = vmatprep.subr.msk.mxu0 %vm224_vm14, %v4756_v21  ;;  %4218 = vmatprep.subr.msk.mxu1 %vm416_vm15, %v4756_v21  ;;  %vm265_vm14 = vcmp.eq.s32.totalorder %v4798_v9, %v5548_v0  ;;  %vm192_vm15 = vcmp.eq.s32.totalorder %v4961_v38, %v5425_v14 }
  0x8b   :  { %4155 = vmatpush1.msk.msra.mxu0 %vm223_vm0, %v4756_v21  ;;  %4219 = vmatpush1.msk.msra.mxu1 %vm415_vm2, %v4756_v21  ;;  %vm258_vm0 = vcmp.eq.s32.totalorder %v4806_v12, %v5538_v63  ;;  %vm191_vm2 = vcmp.eq.s32.totalorder %v4961_v38, %v5435_v15 }
  0x8c   :  { %4156 = vmatprep.subr.msk.mxu0 %vm216_vm3, %v4756_v21  ;;  %4220 = vmatprep.subr.msk.mxu1 %vm408_vm4, %v4756_v21  ;;  %vm257_vm3 = vcmp.eq.s32.totalorder %v4806_v12, %v5548_v0  ;;  %vm184_vm4 = vcmp.eq.s32.totalorder %v4976_v40, %v5425_v14 }
  0x8d   :  { %4157 = vmatpush1.msk.msra.mxu0 %vm215_vm5, %v4756_v21  ;;  %4221 = vmatpush1.msk.msra.mxu1 %vm407_vm6, %v4756_v21  ;;  %vm250_vm5 = vcmp.eq.s32.totalorder %v4820_v16, %v5538_v63  ;;  %vm183_vm6 = vcmp.eq.s32.totalorder %v4976_v40, %v5435_v15 }
  0x8e   :  { %4158 = vmatprep.subr.msk.mxu0 %vm208_vm7, %v4756_v21  ;;  %4222 = vmatprep.subr.msk.mxu1 %vm400_vm8, %v4756_v21  ;;  %vm249_vm7 = vcmp.eq.s32.totalorder %v4820_v16, %v5548_v0  ;;  %vm176_vm8 = vcmp.eq.s32.totalorder %v4991_v41, %v5425_v14 }
  0x8f   :  { %4159 = vmatpush1.msk.msra.mxu0 %vm207_vm9, %v4756_v21  ;;  %4223 = vmatpush1.msk.msra.mxu1 %vm399_vm10, %v4756_v21  ;;  %vm242_vm9 = vcmp.eq.s32.totalorder %v4826_v18, %v5538_v63  ;;  %vm175_vm10 = vcmp.eq.s32.totalorder %v4991_v41, %v5435_v15 }
  0x90   :  { %2519 = vmatprep.mubr.f32.mxu1 %v4755_v1  ;;  %4160 = vmatprep.subr.msk.mxu0 %vm200_vm11, %v4756_v21  ;;  %vm241_vm11 = vcmp.eq.s32.totalorder %v4826_v18, %v5548_v0 }
  0x91   :  { %4224 = vmatmul.mubr.msk.f32.vlgmr.msra.gmra.mxu1 %vm2097_vm1, %v4973_v39  ;;  %4225 = vmatprep.subr.msk.mxu1 %vm266_vm12, %v4756_v21  ;;  %vm168_vm12 = vcmp.eq.s32.totalorder %v5007_v42, %v5425_v14  ;;  %v5938_v39 = vrot.slane %v4795_v8, %v5910_v6  ;;  %v4656_v8 = vld [vmem:[#allocation5 + $0x8] sm:$0x7] }
  0x92   :  { %4161 = vmatpush1.msk.msra.mxu0 %vm199_vm13, %v4756_v21  ;;  %4226 = vmatpush1.msk.msra.mxu1 %vm265_vm14, %v4756_v21  ;;  %vm234_vm13 = vcmp.eq.s32.totalorder %v4848_v22, %v5538_v63  ;;  %vm167_vm14 = vcmp.eq.s32.totalorder %v5007_v42, %v5435_v15 }
  0x93   :  { %4162 = vmatprep.subr.msk.mxu0 %vm192_vm15, %v4756_v21  ;;  %4227 = vmatprep.subr.msk.mxu1 %vm258_vm0, %v4756_v21  ;;  %vm233_vm15 = vcmp.eq.s32.totalorder %v4848_v22, %v5548_v0  ;;  %vm160_vm0 = vcmp.eq.s32.totalorder %v5022_v43, %v5425_v14 }
  0x94   :  { %4163 = vmatpush1.msk.msra.mxu0 %vm191_vm2, %v4756_v21  ;;  %4228 = vmatpush1.msk.msra.mxu1 %vm257_vm3, %v4756_v21  ;;  %vm226_vm2 = vcmp.eq.s32.totalorder %v4868_v25, %v5538_v63  ;;  %vm159_vm3 = vcmp.eq.s32.totalorder %v5022_v43, %v5435_v15 }
  0x95   :  { %4164 = vmatprep.subr.msk.mxu0 %vm184_vm4, %v4756_v21  ;;  %4229 = vmatprep.subr.msk.mxu1 %vm250_vm5, %v4756_v21  ;;  %vm225_vm4 = vcmp.eq.s32.totalorder %v4868_v25, %v5548_v0  ;;  %vm152_vm5 = vcmp.eq.s32.totalorder %v5037_v44, %v5425_v14 }
  0x96   :  { %4165 = vmatpush1.msk.msra.mxu0 %vm183_vm6, %v4756_v21  ;;  %4230 = vmatpush1.msk.msra.mxu1 %vm249_vm7, %v4756_v21  ;;  %vm218_vm6 = vcmp.eq.s32.totalorder %v4892_v29, %v5538_v63  ;;  %vm151_vm7 = vcmp.eq.s32.totalorder %v5037_v44, %v5435_v15 }
  0x97   :  { %4166 = vmatprep.subr.msk.mxu0 %vm176_vm8, %v4756_v21  ;;  %4231 = vmatprep.subr.msk.mxu1 %vm242_vm9, %v4756_v21  ;;  %vm217_vm8 = vcmp.eq.s32.totalorder %v4892_v29, %v5548_v0  ;;  %vm144_vm9 = vcmp.eq.s32.totalorder %v4790_v2, %v5425_v14 }
  0x98   :  { %4167 = vmatpush1.msk.msra.mxu0 %vm175_vm10, %v4756_v21  ;;  %4232 = vmatpush1.msk.msra.mxu1 %vm241_vm11, %v4756_v21  ;;  %vm210_vm10 = vcmp.eq.s32.totalorder %v4904_v31, %v5538_v63  ;;  %vm143_vm11 = vcmp.eq.s32.totalorder %v4790_v2, %v5435_v15 }
  0x99   :  { %4168 = vmatprep.subr.msk.mxu0 %vm168_vm12, %v4756_v21  ;;  %4233 = vmatprep.subr.msk.mxu1 %vm234_vm13, %v4756_v21  ;;  %vm209_vm12 = vcmp.eq.s32.totalorder %v4904_v31, %v5548_v0  ;;  %vm392_vm13 = vcmp.eq.s32.totalorder %v5064_v45, %v5425_v14 }
  0x9a   :  { %4169 = vmatpush1.msk.msra.mxu0 %vm167_vm14, %v4756_v21  ;;  %4234 = vmatpush1.msk.msra.mxu1 %vm233_vm15, %v4756_v21  ;;  %vm202_vm14 = vcmp.eq.s32.totalorder %v4938_v35, %v5538_v63  ;;  %vm391_vm15 = vcmp.eq.s32.totalorder %v5064_v45, %v5435_v15 }
  0x9b   :  { %4170 = vmatprep.subr.msk.mxu0 %vm160_vm0, %v4756_v21  ;;  %4235 = vmatprep.subr.msk.mxu1 %vm226_vm2, %v4756_v21  ;;  %vm201_vm0 = vcmp.eq.s32.totalorder %v4938_v35, %v5548_v0  ;;  %vm384_vm2 = vcmp.eq.s32.totalorder %v5079_v46, %v5425_v14 }
  0x9c   :  { %4171 = vmatpush1.msk.msra.mxu0 %vm159_vm3, %v4756_v21  ;;  %4236 = vmatpush1.msk.msra.mxu1 %vm225_vm4, %v4756_v21  ;;  %vm194_vm3 = vcmp.eq.s32.totalorder %v4961_v38, %v5538_v63  ;;  %vm383_vm4 = vcmp.eq.s32.totalorder %v5079_v46, %v5435_v15 }
  0x9d   :  { %4172 = vmatprep.subr.msk.mxu0 %vm152_vm5, %v4756_v21  ;;  %4237 = vmatprep.subr.msk.mxu1 %vm218_vm6, %v4756_v21  ;;  %vm193_vm5 = vcmp.eq.s32.totalorder %v4961_v38, %v5548_v0  ;;  %vm376_vm6 = vcmp.eq.s32.totalorder %v5094_v47, %v5425_v14 }
  0x9e   :  { %4173 = vmatpush1.msk.msra.mxu0 %vm151_vm7, %v4756_v21  ;;  %4238 = vmatpush1.msk.msra.mxu1 %vm217_vm8, %v4756_v21  ;;  %vm186_vm7 = vcmp.eq.s32.totalorder %v4976_v40, %v5538_v63  ;;  %vm375_vm8 = vcmp.eq.s32.totalorder %v5094_v47, %v5435_v15 }
  0x9f   :  { %4174 = vmatprep.subr.msk.mxu0 %vm144_vm9, %v4756_v21  ;;  %4239 = vmatprep.subr.msk.mxu1 %vm210_vm10, %v4756_v21  ;;  %vm185_vm9 = vcmp.eq.s32.totalorder %v4976_v40, %v5548_v0  ;;  %vm368_vm10 = vcmp.eq.s32.totalorder %v5109_v48, %v5425_v14 }
  0xa0   :  { %4175 = vmatpush1.msk.msra.mxu0 %vm143_vm11, %v4756_v21  ;;  %4240 = vmatpush1.msk.msra.mxu1 %vm209_vm12, %v4756_v21  ;;  %vm178_vm11 = vcmp.eq.s32.totalorder %v4991_v41, %v5538_v63  ;;  %vm367_vm12 = vcmp.eq.s32.totalorder %v5109_v48, %v5435_v15 }
  0xa1   :  { %4176 = vmatprep.subr.msk.mxu0 %vm392_vm13, %v4756_v21  ;;  %4241 = vmatprep.subr.msk.mxu1 %vm202_vm14, %v4756_v21  ;;  %vm177_vm13 = vcmp.eq.s32.totalorder %v4991_v41, %v5548_v0  ;;  %vm360_vm14 = vcmp.eq.s32.totalorder %v5124_v49, %v5425_v14 }
  0xa2   :  { %4177 = vmatpush2.msk.msra.mxu0 %vm391_vm15, %v4756_v21  ;;  %4242 = vmatpush1.msk.msra.mxu1 %vm201_vm0, %v4756_v21  ;;  %vm170_vm15 = vcmp.eq.s32.totalorder %v5007_v42, %v5538_v63  ;;  %vm359_vm0 = vcmp.eq.s32.totalorder %v5124_v49, %v5435_v15 }
  0xa3   :  { %4178 = vmatprep.subr.msk.mxu0 %vm384_vm2, %v4756_v21  ;;  %4243 = vmatprep.subr.msk.mxu1 %vm194_vm3, %v4756_v21  ;;  %vm169_vm2 = vcmp.eq.s32.totalorder %v5007_v42, %v5548_v0  ;;  %vm352_vm3 = vcmp.eq.s32.totalorder %v5139_v50, %v5425_v14 }
  0xa4   :  { %4179 = vmatpush2.msk.msra.mxu0 %vm383_vm4, %v4756_v21  ;;  %4244 = vmatpush1.msk.msra.mxu1 %vm193_vm5, %v4756_v21  ;;  %vm162_vm4 = vcmp.eq.s32.totalorder %v5022_v43, %v5538_v63  ;;  %vm351_vm5 = vcmp.eq.s32.totalorder %v5139_v50, %v5435_v15 }
  0xa5   :  { %4180 = vmatprep.subr.msk.mxu0 %vm376_vm6, %v4756_v21  ;;  %4245 = vmatprep.subr.msk.mxu1 %vm186_vm7, %v4756_v21  ;;  %vm161_vm6 = vcmp.eq.s32.totalorder %v5022_v43, %v5548_v0  ;;  %vm344_vm7 = vcmp.eq.s32.totalorder %v5154_v51, %v5425_v14 }
  0xa6   :  { %4181 = vmatpush2.msk.msra.mxu0 %vm375_vm8, %v4756_v21  ;;  %4246 = vmatpush1.msk.msra.mxu1 %vm185_vm9, %v4756_v21  ;;  %vm154_vm8 = vcmp.eq.s32.totalorder %v5037_v44, %v5538_v63  ;;  %vm343_vm9 = vcmp.eq.s32.totalorder %v5154_v51, %v5435_v15 }
  0xa7   :  { %4182 = vmatprep.subr.msk.mxu0 %vm368_vm10, %v4756_v21  ;;  %4247 = vmatprep.subr.msk.mxu1 %vm178_vm11, %v4756_v21  ;;  %vm153_vm10 = vcmp.eq.s32.totalorder %v5037_v44, %v5548_v0  ;;  %vm336_vm11 = vcmp.eq.s32.totalorder %v5169_v52, %v5425_v14 }
  0xa8   :  { %4183 = vmatpush2.msk.msra.mxu0 %vm367_vm12, %v4756_v21  ;;  %4248 = vmatpush1.msk.msra.mxu1 %vm177_vm13, %v4756_v21  ;;  %vm146_vm12 = vcmp.eq.s32.totalorder %v4790_v2, %v5538_v63  ;;  %vm335_vm13 = vcmp.eq.s32.totalorder %v5169_v52, %v5435_v15 }
  0xa9   :  { %4184 = vmatprep.subr.msk.mxu0 %vm360_vm14, %v4756_v21  ;;  %4249 = vmatprep.subr.msk.mxu1 %vm170_vm15, %v4756_v21  ;;  %vm145_vm14 = vcmp.eq.s32.totalorder %v4790_v2, %v5548_v0  ;;  %vm328_vm15 = vcmp.eq.s32.totalorder %v5184_v53, %v5425_v14 }
  0xaa   :  { %4185 = vmatpush2.msk.msra.mxu0 %vm359_vm0, %v4756_v21  ;;  %4250 = vmatpush1.msk.msra.mxu1 %vm169_vm2, %v4756_v21  ;;  %vm394_vm0 = vcmp.eq.s32.totalorder %v5064_v45, %v5538_v63  ;;  %vm327_vm2 = vcmp.eq.s32.totalorder %v5184_v53, %v5435_v15 }
  0xab   :  { %4186 = vmatprep.subr.msk.mxu0 %vm352_vm3, %v4756_v21  ;;  %4251 = vmatprep.subr.msk.mxu1 %vm162_vm4, %v4756_v21  ;;  %vm393_vm3 = vcmp.eq.s32.totalorder %v5064_v45, %v5548_v0  ;;  %vm320_vm4 = vcmp.eq.s32.totalorder %v5199_v54, %v5425_v14 }
  0xac   :  { %4187 = vmatpush2.msk.msra.mxu0 %vm351_vm5, %v4756_v21  ;;  %4252 = vmatpush1.msk.msra.mxu1 %vm161_vm6, %v4756_v21  ;;  %vm386_vm5 = vcmp.eq.s32.totalorder %v5079_v46, %v5538_v63  ;;  %vm319_vm6 = vcmp.eq.s32.totalorder %v5199_v54, %v5435_v15 }
  0xad   :  { %4188 = vmatprep.subr.msk.mxu0 %vm344_vm7, %v4756_v21  ;;  %4253 = vmatprep.subr.msk.mxu1 %vm154_vm8, %v4756_v21  ;;  %vm385_vm7 = vcmp.eq.s32.totalorder %v5079_v46, %v5548_v0  ;;  %vm312_vm8 = vcmp.eq.s32.totalorder %v5214_v55, %v5425_v14 }
  0xae   :  { %4189 = vmatpush2.msk.msra.mxu0 %vm343_vm9, %v4756_v21  ;;  %4254 = vmatpush1.msk.msra.mxu1 %vm153_vm10, %v4756_v21  ;;  %vm378_vm9 = vcmp.eq.s32.totalorder %v5094_v47, %v5538_v63  ;;  %vm311_vm10 = vcmp.eq.s32.totalorder %v5214_v55, %v5435_v15 }
  0xaf   :  { %4190 = vmatprep.subr.msk.mxu0 %vm336_vm11, %v4756_v21  ;;  %4255 = vmatprep.subr.msk.mxu1 %vm146_vm12, %v4756_v21  ;;  %vm377_vm11 = vcmp.eq.s32.totalorder %v5094_v47, %v5548_v0  ;;  %vm304_vm12 = vcmp.eq.s32.totalorder %v5229_v56, %v5425_v14 }
  0xb0   :  { %4191 = vmatpush2.msk.msra.mxu0 %vm335_vm13, %v4756_v21  ;;  %4256 = vmatpush1.msk.msra.mxu1 %vm145_vm14, %v4756_v21  ;;  %vm370_vm13 = vcmp.eq.s32.totalorder %v5109_v48, %v5538_v63  ;;  %vm303_vm14 = vcmp.eq.s32.totalorder %v5229_v56, %v5435_v15 }
  0xb1   :  { %4192 = vmatprep.subr.msk.mxu0 %vm328_vm15, %v4756_v21  ;;  %4257 = vmatprep.subr.msk.mxu1 %vm394_vm0, %v4756_v21  ;;  %vm369_vm15 = vcmp.eq.s32.totalorder %v5109_v48, %v5548_v0  ;;  %vm296_vm0 = vcmp.eq.s32.totalorder %v5244_v57, %v5425_v14 }
  0xb2   :  { %4193 = vmatpush2.msk.msra.mxu0 %vm327_vm2, %v4756_v21  ;;  %4258 = vmatpush2.msk.msra.mxu1 %vm393_vm3, %v4756_v21  ;;  %vm362_vm2 = vcmp.eq.s32.totalorder %v5124_v49, %v5538_v63  ;;  %vm295_vm3 = vcmp.eq.s32.totalorder %v5244_v57, %v5435_v15 }
  0xb3   :  { %4194 = vmatprep.subr.msk.mxu0 %vm320_vm4, %v4756_v21  ;;  %4259 = vmatprep.subr.msk.mxu1 %vm386_vm5, %v4756_v21  ;;  %vm361_vm4 = vcmp.eq.s32.totalorder %v5124_v49, %v5548_v0  ;;  %vm288_vm5 = vcmp.eq.s32.totalorder %v5259_v58, %v5425_v14 }
  0xb4   :  { %4195 = vmatpush2.msk.msra.mxu0 %vm319_vm6, %v4756_v21  ;;  %4260 = vmatpush2.msk.msra.mxu1 %vm385_vm7, %v4756_v21  ;;  %vm354_vm6 = vcmp.eq.s32.totalorder %v5139_v50, %v5538_v63  ;;  %vm287_vm7 = vcmp.eq.s32.totalorder %v5259_v58, %v5435_v15 }
  0xb5   :  { %4196 = vmatprep.subr.msk.mxu0 %vm312_vm8, %v4756_v21  ;;  %4261 = vmatprep.subr.msk.mxu1 %vm378_vm9, %v4756_v21  ;;  %vm353_vm8 = vcmp.eq.s32.totalorder %v5139_v50, %v5548_v0  ;;  %vm280_vm9 = vcmp.eq.s32.totalorder %v5274_v59, %v5425_v14 }
  0xb6   :  { %4197 = vmatpush2.msk.msra.mxu0 %vm311_vm10, %v4756_v21  ;;  %4262 = vmatpush2.msk.msra.mxu1 %vm377_vm11, %v4756_v21  ;;  %vm346_vm10 = vcmp.eq.s32.totalorder %v5154_v51, %v5538_v63  ;;  %vm279_vm11 = vcmp.eq.s32.totalorder %v5274_v59, %v5435_v15 }
  0xb7   :  { %4198 = vmatprep.subr.msk.mxu0 %vm304_vm12, %v4756_v21  ;;  %4263 = vmatprep.subr.msk.mxu1 %vm370_vm13, %v4756_v21  ;;  %vm345_vm12 = vcmp.eq.s32.totalorder %v5154_v51, %v5548_v0  ;;  %vm272_vm13 = vcmp.eq.s32.totalorder %v5289_v60, %v5425_v14  ;;  %v6461_v14 = vrot.slane %v5403_v7, %v5910_v6 }
  0xb8   :  { %4199 = vmatpush2.msk.msra.mxu0 %vm303_vm14, %v4756_v21  ;;  %4264 = vmatpush2.msk.msra.mxu1 %vm369_vm15, %v4756_v21  ;;  %vm338_vm14 = vcmp.eq.s32.totalorder %v5169_v52, %v5538_v63  ;;  %vm271_vm15 = vcmp.eq.s32.totalorder %v5289_v60, %v5435_v15 }
  0xb9   :  { %4200 = vmatprep.subr.msk.mxu0 %vm296_vm0, %v4756_v21  ;;  %4265 = vmatprep.subr.msk.mxu1 %vm362_vm2, %v4756_v21  ;;  %vm337_vm0 = vcmp.eq.s32.totalorder %v5169_v52, %v5548_v0  ;;  %vm330_vm2 = vcmp.eq.s32.totalorder %v5184_v53, %v5538_v63 }
  0xba   :  { %4201 = vmatpush2.msk.msra.mxu0 %vm295_vm3, %v4756_v21  ;;  %4266 = vmatpush2.msk.msra.mxu1 %vm361_vm4, %v4756_v21  ;;  %vm458_vm3 = vcmp.eq.s32.totalorder %v4801_v10, %v5538_v63  ;;  %vm329_vm4 = vcmp.eq.s32.totalorder %v5184_v53, %v5548_v0 }
  0xbb   :  { %4202 = vmatprep.subr.msk.mxu0 %vm288_vm5, %v4756_v21  ;;  %4267 = vmatprep.subr.msk.mxu1 %vm354_vm6, %v4756_v21  ;;  %vm457_vm5 = vcmp.eq.s32.totalorder %v4801_v10, %v5548_v0  ;;  %vm322_vm6 = vcmp.eq.s32.totalorder %v5199_v54, %v5538_v63 }
  0xbc   :  { %4203 = vmatpush2.msk.msra.mxu0 %vm287_vm7, %v4756_v21  ;;  %4268 = vmatpush2.msk.msra.mxu1 %vm353_vm8, %v4756_v21  ;;  %vm450_vm7 = vcmp.eq.s32.totalorder %v4809_v13, %v5538_v63  ;;  %vm321_vm8 = vcmp.eq.s32.totalorder %v5199_v54, %v5548_v0 }
  0xbd   :  { %4204 = vmatprep.subr.msk.mxu0 %vm280_vm9, %v4756_v21  ;;  %4269 = vmatprep.subr.msk.mxu1 %vm346_vm10, %v4756_v21  ;;  %vm449_vm9 = vcmp.eq.s32.totalorder %v4809_v13, %v5548_v0  ;;  %vm314_vm10 = vcmp.eq.s32.totalorder %v5214_v55, %v5538_v63 }
  0xbe   :  { %4205 = vmatpush2.msk.msra.mxu0 %vm279_vm11, %v4756_v21  ;;  %4270 = vmatpush2.msk.msra.mxu1 %vm345_vm12, %v4756_v21  ;;  %vm442_vm11 = vcmp.eq.s32.totalorder %v4823_v17, %v5538_v63  ;;  %vm313_vm12 = vcmp.eq.s32.totalorder %v5214_v55, %v5548_v0 }
  0xbf   :  { %4206 = vmatprep.subr.msk.mxu0 %vm272_vm13, %v4756_v21  ;;  %4271 = vmatprep.subr.msk.mxu1 %vm338_vm14, %v4756_v21  ;;  %vm441_vm13 = vcmp.eq.s32.totalorder %v4823_v17, %v5548_v0  ;;  %vm306_vm14 = vcmp.eq.s32.totalorder %v5229_v56, %v5538_v63 }
  0xc0   :  { %4207 = vmatpush2.msk.msra.mxu0 %vm271_vm15, %v4756_v21  ;;  %2448 = vmatprep.mubr.f32.mxu0 %v5325_v62  ;;  %vm434_vm15 = vcmp.eq.s32.totalorder %v4829_v19, %v5538_v63 }
  0xc1   :  { %4272 = vmatpush2.msk.msra.mxu1 %vm337_vm0, %v4756_v21  ;;  %2449 = vmatmul.mubr.f32.vlgmr.msra.gmra.mxu0 %v5303_v61  ;;  %vm305_vm0 = vcmp.eq.s32.totalorder %v5229_v56, %v5548_v0 }
  0xc2   :  { %4273 = vmatprep.subr.msk.mxu1 %vm330_vm2, %v4756_v21  ;;  %4289 = vmatprep.subr.msk.mxu0 %vm458_vm3, %v4756_v21  ;;  %vm433_vm2 = vcmp.eq.s32.totalorder %v4829_v19, %v5548_v0  ;;  %vm298_vm3 = vcmp.eq.s32.totalorder %v5244_v57, %v5538_v63 }
  0xc3   :  { %4274 = vmatpush2.msk.msra.mxu1 %vm329_vm4, %v4756_v21  ;;  %4290 = vmatpush1.msk.msra.mxu0 %vm457_vm5, %v4756_v21  ;;  %vm426_vm4 = vcmp.eq.s32.totalorder %v4859_v24, %v5538_v63  ;;  %vm297_vm5 = vcmp.eq.s32.totalorder %v5244_v57, %v5548_v0 }
  0xc4   :  { %4275 = vmatprep.subr.msk.mxu1 %vm322_vm6, %v4756_v21  ;;  %4291 = vmatprep.subr.msk.mxu0 %vm450_vm7, %v4756_v21  ;;  %vm425_vm6 = vcmp.eq.s32.totalorder %v4859_v24, %v5548_v0  ;;  %vm290_vm7 = vcmp.eq.s32.totalorder %v5259_v58, %v5538_v63 }
  0xc5   :  { %4276 = vmatpush2.msk.msra.mxu1 %vm321_vm8, %v4756_v21  ;;  %4292 = vmatpush1.msk.msra.mxu0 %vm449_vm9, %v4756_v21  ;;  %vm418_vm8 = vcmp.eq.s32.totalorder %v4877_v27, %v5538_v63  ;;  %vm289_vm9 = vcmp.eq.s32.totalorder %v5259_v58, %v5548_v0 }
  0xc6   :  { %4277 = vmatprep.subr.msk.mxu1 %vm314_vm10, %v4756_v21  ;;  %4293 = vmatprep.subr.msk.mxu0 %vm442_vm11, %v4756_v21  ;;  %vm417_vm10 = vcmp.eq.s32.totalorder %v4877_v27, %v5548_v0  ;;  %vm282_vm11 = vcmp.eq.s32.totalorder %v5274_v59, %v5538_v63 }
  0xc7   :  { %4278 = vmatpush2.msk.msra.mxu1 %vm313_vm12, %v4756_v21  ;;  %4294 = vmatpush1.msk.msra.mxu0 %vm441_vm13, %v4756_v21  ;;  %vm410_vm12 = vcmp.eq.s32.totalorder %v4895_v30, %v5538_v63  ;;  %vm281_vm13 = vcmp.eq.s32.totalorder %v5274_v59, %v5548_v0 }
  0xc8   :  { %4279 = vmatprep.subr.msk.mxu1 %vm306_vm14, %v4756_v21  ;;  %4295 = vmatprep.subr.msk.mxu0 %vm434_vm15, %v4756_v21  ;;  %vm409_vm14 = vcmp.eq.s32.totalorder %v4895_v30, %v5548_v0  ;;  %vm274_vm15 = vcmp.eq.s32.totalorder %v5289_v60, %v5538_v63 }
  0xc9   :  { %4280 = vmatpush2.msk.msra.mxu1 %vm305_vm0, %v4756_v21  ;;  %4296 = vmatpush1.msk.msra.mxu0 %vm433_vm2, %v4756_v21  ;;  %vm402_vm0 = vcmp.eq.s32.totalorder %v4915_v33, %v5538_v63  ;;  %vm273_vm2 = vcmp.eq.s32.totalorder %v5289_v60, %v5548_v0  ;;  %v6570_v63 = vrot.slane %v5516_v37, %v5910_v6 }
  0xca   :  { %4281 = vmatprep.subr.msk.mxu1 %vm298_vm3, %v4756_v21  ;;  %4297 = vmatprep.subr.msk.mxu0 %vm426_vm4, %v4756_v21  ;;  %vm401_vm3 = vcmp.eq.s32.totalorder %v4915_v33, %v5548_v0  ;;  %vm1252_vm4 = vcmp.eq.s32.totalorder %v4798_v9, %v5938_v39 }
  0xcb   :  { %4282 = vmatpush2.msk.msra.mxu1 %vm297_vm5, %v4756_v21  ;;  %4298 = vmatpush1.msk.msra.mxu0 %vm425_vm6, %v4756_v21  ;;  %vm1444_vm5 = vcmp.eq.s32.totalorder %v4801_v10, %v5938_v39  ;;  %vm1251_vm6 = vcmp.eq.s32.totalorder %v4798_v9, %v5948_v3 }
  0xcc   :  { %4283 = vmatprep.subr.msk.mxu1 %vm290_vm7, %v4756_v21  ;;  %4299 = vmatprep.subr.msk.mxu0 %vm418_vm8, %v4756_v21  ;;  %vm1443_vm7 = vcmp.eq.s32.totalorder %v4801_v10, %v5948_v3  ;;  %vm1244_vm8 = vcmp.eq.s32.totalorder %v4806_v12, %v5938_v39 }
  0xcd   :  { %4284 = vmatpush2.msk.msra.mxu1 %vm289_vm9, %v4756_v21  ;;  %4300 = vmatpush1.msk.msra.mxu0 %vm417_vm10, %v4756_v21  ;;  %vm1436_vm9 = vcmp.eq.s32.totalorder %v4809_v13, %v5938_v39  ;;  %vm1243_vm10 = vcmp.eq.s32.totalorder %v4806_v12, %v5948_v3 }
  0xce   :  { %4285 = vmatprep.subr.msk.mxu1 %vm282_vm11, %v4756_v21  ;;  %4301 = vmatprep.subr.msk.mxu0 %vm410_vm12, %v4756_v21  ;;  %vm1435_vm11 = vcmp.eq.s32.totalorder %v4809_v13, %v5948_v3  ;;  %vm1236_vm12 = vcmp.eq.s32.totalorder %v4820_v16, %v5938_v39 }
  0xcf   :  { %4286 = vmatpush2.msk.msra.mxu1 %vm281_vm13, %v4756_v21  ;;  %4302 = vmatpush1.msk.msra.mxu0 %vm409_vm14, %v4756_v21  ;;  %vm1428_vm13 = vcmp.eq.s32.totalorder %v4823_v17, %v5938_v39  ;;  %vm1235_vm14 = vcmp.eq.s32.totalorder %v4820_v16, %v5948_v3 }
  0xd0   :  { %4287 = vmatprep.subr.msk.mxu1 %vm274_vm15, %v4756_v21  ;;  %4303 = vmatprep.subr.msk.mxu0 %vm402_vm0, %v4756_v21  ;;  %vm1427_vm15 = vcmp.eq.s32.totalorder %v4823_v17, %v5948_v3  ;;  %vm1228_vm0 = vcmp.eq.s32.totalorder %v4826_v18, %v5938_v39 }
  0xd1   :  { %4288 = vmatpush2.msk.msra.mxu1 %vm273_vm2, %v4756_v21  ;;  %2590 = vmatprep.mubr.f32.mxu1 %v5325_v62  ;;  %vm1420_vm2 = vcmp.eq.s32.totalorder %v4829_v19, %v5938_v39 }
  0xd2   :  { %4304 = vmatpush1.msk.msra.mxu0 %vm401_vm3, %v4756_v21  ;;  %2661 = vmatprep.mubr.f32.mxu0 %v4755_v1  ;;  %vm1227_vm3 = vcmp.eq.s32.totalorder %v4826_v18, %v5948_v3 }
  0xd3   :  { %2591 = vmatmul.mubr.f32.vlgmr.msra.gmra.mxu1 %v5303_v61  ;;  %4305 = vmatmul.mubr.msk.f32.vlgmr.msra.gmra.mxu0 %vm2097_vm1, %v4656_v8  ;;  %v6056_v61 = vrot.slane %v4917_v34, %v5910_v6  ;;  %v6333_v34 = vld [vmem:[#allocation7] sm:$0x77] }
  0xd4   :  { %4306 = vmatprep.subr.msk.mxu0 %vm1252_vm4, %v4756_v21  ;;  %4370 = vmatprep.subr.msk.mxu1 %vm1444_vm5, %v4756_v21  ;;  %vm1419_vm4 = vcmp.eq.s32.totalorder %v4829_v19, %v5948_v3  ;;  %vm1220_vm5 = vcmp.eq.s32.totalorder %v4848_v22, %v5938_v39  ;;  %v6355_v62 = vcombine.high %v6333_v34, %v6333_v34 }
  0xd5   :  { %4307 = vmatpush1.msk.msra.mxu0 %vm1251_vm6, %v4756_v21  ;;  %4371 = vmatpush1.msk.msra.mxu1 %vm1443_vm7, %v4756_v21  ;;  %vm1412_vm6 = vcmp.eq.s32.totalorder %v4859_v24, %v5938_v39  ;;  %vm1219_vm7 = vcmp.eq.s32.totalorder %v4848_v22, %v5948_v3 }
  0xd6   :  { %4308 = vmatprep.subr.msk.mxu0 %vm1244_vm8, %v4756_v21  ;;  %4372 = vmatprep.subr.msk.mxu1 %vm1436_vm9, %v4756_v21  ;;  %vm1411_vm8 = vcmp.eq.s32.totalorder %v4859_v24, %v5948_v3  ;;  %vm1212_vm9 = vcmp.eq.s32.totalorder %v4868_v25, %v5938_v39 }
  0xd7   :  { %4309 = vmatpush1.msk.msra.mxu0 %vm1243_vm10, %v4756_v21  ;;  %4373 = vmatpush1.msk.msra.mxu1 %vm1435_vm11, %v4756_v21  ;;  %vm1404_vm10 = vcmp.eq.s32.totalorder %v4877_v27, %v5938_v39  ;;  %vm1211_vm11 = vcmp.eq.s32.totalorder %v4868_v25, %v5948_v3 }
  0xd8   :  { %4310 = vmatprep.subr.msk.mxu0 %vm1236_vm12, %v4756_v21  ;;  %4374 = vmatprep.subr.msk.mxu1 %vm1428_vm13, %v4756_v21  ;;  %vm1403_vm12 = vcmp.eq.s32.totalorder %v4877_v27, %v5948_v3  ;;  %vm1204_vm13 = vcmp.eq.s32.totalorder %v4892_v29, %v5938_v39 }
  0xd9   :  { %4311 = vmatpush1.msk.msra.mxu0 %vm1235_vm14, %v4756_v21  ;;  %4375 = vmatpush1.msk.msra.mxu1 %vm1427_vm15, %v4756_v21  ;;  %vm1396_vm14 = vcmp.eq.s32.totalorder %v4895_v30, %v5938_v39  ;;  %vm1203_vm15 = vcmp.eq.s32.totalorder %v4892_v29, %v5948_v3 }
  0xda   :  { %4312 = vmatprep.subr.msk.mxu0 %vm1228_vm0, %v4756_v21  ;;  %4376 = vmatprep.subr.msk.mxu1 %vm1420_vm2, %v4756_v21  ;;  %vm1395_vm0 = vcmp.eq.s32.totalorder %v4895_v30, %v5948_v3  ;;  %vm1196_vm2 = vcmp.eq.s32.totalorder %v4904_v31, %v5938_v39 }
  0xdb   :  { %4313 = vmatpush1.msk.msra.mxu0 %vm1227_vm3, %v4756_v21  ;;  %4377 = vmatpush1.msk.msra.mxu1 %vm1419_vm4, %v4756_v21  ;;  %vm1388_vm3 = vcmp.eq.s32.totalorder %v4915_v33, %v5938_v39  ;;  %vm1195_vm4 = vcmp.eq.s32.totalorder %v4904_v31, %v5948_v3 }
  0xdc   :  { %4314 = vmatprep.subr.msk.mxu0 %vm1220_vm5, %v4756_v21  ;;  %4378 = vmatprep.subr.msk.mxu1 %vm1412_vm6, %v4756_v21  ;;  %vm1387_vm5 = vcmp.eq.s32.totalorder %v4915_v33, %v5948_v3  ;;  %vm1188_vm6 = vcmp.eq.s32.totalorder %v4938_v35, %v5938_v39 }
  0xdd   :  { %4315 = vmatpush1.msk.msra.mxu0 %vm1219_vm7, %v4756_v21  ;;  %4379 = vmatpush1.msk.msra.mxu1 %vm1411_vm8, %v4756_v21  ;;  %vm1254_vm7 = vcmp.eq.s32.totalorder %v4798_v9, %v6046_v11  ;;  %vm1187_vm8 = vcmp.eq.s32.totalorder %v4938_v35, %v5948_v3 }
  0xde   :  { %4316 = vmatprep.subr.msk.mxu0 %vm1212_vm9, %v4756_v21  ;;  %4380 = vmatprep.subr.msk.mxu1 %vm1404_vm10, %v4756_v21  ;;  %vm1253_vm9 = vcmp.eq.s32.totalorder %v4798_v9, %v6056_v61  ;;  %vm1180_vm10 = vcmp.eq.s32.totalorder %v4961_v38, %v5938_v39 }
  0xdf   :  { %4317 = vmatpush1.msk.msra.mxu0 %vm1211_vm11, %v4756_v21  ;;  %4381 = vmatpush1.msk.msra.mxu1 %vm1403_vm12, %v4756_v21  ;;  %vm1246_vm11 = vcmp.eq.s32.totalorder %v4806_v12, %v6046_v11  ;;  %vm1179_vm12 = vcmp.eq.s32.totalorder %v4961_v38, %v5948_v3 }
  0xe0   :  { %4318 = vmatprep.subr.msk.mxu0 %vm1204_vm13, %v4756_v21  ;;  %4382 = vmatprep.subr.msk.mxu1 %vm1396_vm14, %v4756_v21  ;;  %vm1245_vm13 = vcmp.eq.s32.totalorder %v4806_v12, %v6056_v61  ;;  %vm1172_vm14 = vcmp.eq.s32.totalorder %v4976_v40, %v5938_v39 }
  0xe1   :  { %4319 = vmatpush1.msk.msra.mxu0 %vm1203_vm15, %v4756_v21  ;;  %4383 = vmatpush1.msk.msra.mxu1 %vm1395_vm0, %v4756_v21  ;;  %vm1238_vm15 = vcmp.eq.s32.totalorder %v4820_v16, %v6046_v11  ;;  %vm1171_vm0 = vcmp.eq.s32.totalorder %v4976_v40, %v5948_v3 }
  0xe2   :  { %4320 = vmatprep.subr.msk.mxu0 %vm1196_vm2, %v4756_v21  ;;  %4384 = vmatprep.subr.msk.mxu1 %vm1388_vm3, %v4756_v21  ;;  %vm1237_vm2 = vcmp.eq.s32.totalorder %v4820_v16, %v6056_v61  ;;  %vm1164_vm3 = vcmp.eq.s32.totalorder %v4991_v41, %v5938_v39 }
  0xe3   :  { %4321 = vmatpush1.msk.msra.mxu0 %vm1195_vm4, %v4756_v21  ;;  %4385 = vmatpush1.msk.msra.mxu1 %vm1387_vm5, %v4756_v21  ;;  %vm1230_vm4 = vcmp.eq.s32.totalorder %v4826_v18, %v6046_v11  ;;  %vm1163_vm5 = vcmp.eq.s32.totalorder %v4991_v41, %v5948_v3 }
  0xe4   :  { %2811 = vmatprep.mubr.f32.mxu1 %v4755_v1  ;;  %4322 = vmatprep.subr.msk.mxu0 %vm1188_vm6, %v4756_v21  ;;  %vm1229_vm6 = vcmp.eq.s32.totalorder %v4826_v18, %v6056_v61 }
  0xe5   :  { %4386 = vmatmul.mubr.msk.f32.vlgmr.msra.gmra.mxu1 %vm2097_vm1, %v6066_v32  ;;  %4387 = vmatprep.subr.msk.mxu1 %vm1254_vm7, %v4756_v21  ;;  %vm1156_vm7 = vcmp.eq.s32.totalorder %v5007_v42, %v5938_v39 }
  0xe6   :  { %4323 = vmatpush1.msk.msra.mxu0 %vm1187_vm8, %v4756_v21  ;;  %4388 = vmatpush1.msk.msra.mxu1 %vm1253_vm9, %v4756_v21  ;;  %vm1222_vm8 = vcmp.eq.s32.totalorder %v4848_v22, %v6046_v11  ;;  %vm1155_vm9 = vcmp.eq.s32.totalorder %v5007_v42, %v5948_v3 }
  0xe7   :  { %4324 = vmatprep.subr.msk.mxu0 %vm1180_vm10, %v4756_v21  ;;  %4389 = vmatprep.subr.msk.mxu1 %vm1246_vm11, %v4756_v21  ;;  %vm1221_vm10 = vcmp.eq.s32.totalorder %v4848_v22, %v6056_v61  ;;  %vm1148_vm11 = vcmp.eq.s32.totalorder %v5022_v43, %v5938_v39 }
  0xe8   :  { %4325 = vmatpush1.msk.msra.mxu0 %vm1179_vm12, %v4756_v21  ;;  %4390 = vmatpush1.msk.msra.mxu1 %vm1245_vm13, %v4756_v21  ;;  %vm1214_vm12 = vcmp.eq.s32.totalorder %v4868_v25, %v6046_v11  ;;  %vm1147_vm13 = vcmp.eq.s32.totalorder %v5022_v43, %v5948_v3 }
  0xe9   :  { %4326 = vmatprep.subr.msk.mxu0 %vm1172_vm14, %v4756_v21  ;;  %4391 = vmatprep.subr.msk.mxu1 %vm1238_vm15, %v4756_v21  ;;  %vm1213_vm14 = vcmp.eq.s32.totalorder %v4868_v25, %v6056_v61  ;;  %vm1140_vm15 = vcmp.eq.s32.totalorder %v5037_v44, %v5938_v39 }
  0xea   :  { %4327 = vmatpush1.msk.msra.mxu0 %vm1171_vm0, %v4756_v21  ;;  %4392 = vmatpush1.msk.msra.mxu1 %vm1237_vm2, %v4756_v21  ;;  %vm1206_vm0 = vcmp.eq.s32.totalorder %v4892_v29, %v6046_v11  ;;  %vm1139_vm2 = vcmp.eq.s32.totalorder %v5037_v44, %v5948_v3 }
  0xeb   :  { %4328 = vmatprep.subr.msk.mxu0 %vm1164_vm3, %v4756_v21  ;;  %4393 = vmatprep.subr.msk.mxu1 %vm1230_vm4, %v4756_v21  ;;  %vm1205_vm3 = vcmp.eq.s32.totalorder %v4892_v29, %v6056_v61  ;;  %vm1132_vm4 = vcmp.eq.s32.totalorder %v4790_v2, %v5938_v39 }
  0xec   :  { %4329 = vmatpush1.msk.msra.mxu0 %vm1163_vm5, %v4756_v21  ;;  %4394 = vmatpush1.msk.msra.mxu1 %vm1229_vm6, %v4756_v21  ;;  %vm1198_vm5 = vcmp.eq.s32.totalorder %v4904_v31, %v6046_v11  ;;  %vm1131_vm6 = vcmp.eq.s32.totalorder %v4790_v2, %v5948_v3 }
  0xed   :  { %4330 = vmatprep.subr.msk.mxu0 %vm1156_vm7, %v4756_v21  ;;  %4395 = vmatprep.subr.msk.mxu1 %vm1222_vm8, %v4756_v21  ;;  %vm1197_vm7 = vcmp.eq.s32.totalorder %v4904_v31, %v6056_v61  ;;  %vm1380_vm8 = vcmp.eq.s32.totalorder %v5064_v45, %v5938_v39 }
  0xee   :  { %4331 = vmatpush1.msk.msra.mxu0 %vm1155_vm9, %v4756_v21  ;;  %4396 = vmatpush1.msk.msra.mxu1 %vm1221_vm10, %v4756_v21  ;;  %vm1190_vm9 = vcmp.eq.s32.totalorder %v4938_v35, %v6046_v11  ;;  %vm1379_vm10 = vcmp.eq.s32.totalorder %v5064_v45, %v5948_v3 }
  0xef   :  { %4332 = vmatprep.subr.msk.mxu0 %vm1148_vm11, %v4756_v21  ;;  %4397 = vmatprep.subr.msk.mxu1 %vm1214_vm12, %v4756_v21  ;;  %vm1189_vm11 = vcmp.eq.s32.totalorder %v4938_v35, %v6056_v61  ;;  %vm1372_vm12 = vcmp.eq.s32.totalorder %v5079_v46, %v5938_v39 }
  0xf0   :  { %4333 = vmatpush1.msk.msra.mxu0 %vm1147_vm13, %v4756_v21  ;;  %4398 = vmatpush1.msk.msra.mxu1 %vm1213_vm14, %v4756_v21  ;;  %vm1182_vm13 = vcmp.eq.s32.totalorder %v4961_v38, %v6046_v11  ;;  %vm1371_vm14 = vcmp.eq.s32.totalorder %v5079_v46, %v5948_v3 }
  0xf1   :  { %4334 = vmatprep.subr.msk.mxu0 %vm1140_vm15, %v4756_v21  ;;  %4399 = vmatprep.subr.msk.mxu1 %vm1206_vm0, %v4756_v21  ;;  %vm1181_vm15 = vcmp.eq.s32.totalorder %v4961_v38, %v6056_v61  ;;  %vm1364_vm0 = vcmp.eq.s32.totalorder %v5094_v47, %v5938_v39 }
  0xf2   :  { %4335 = vmatpush1.msk.msra.mxu0 %vm1139_vm2, %v4756_v21  ;;  %4400 = vmatpush1.msk.msra.mxu1 %vm1205_vm3, %v4756_v21  ;;  %vm1174_vm2 = vcmp.eq.s32.totalorder %v4976_v40, %v6046_v11  ;;  %vm1363_vm3 = vcmp.eq.s32.totalorder %v5094_v47, %v5948_v3 }
  0xf3   :  { %4336 = vmatprep.subr.msk.mxu0 %vm1132_vm4, %v4756_v21  ;;  %4401 = vmatprep.subr.msk.mxu1 %vm1198_vm5, %v4756_v21  ;;  %vm1173_vm4 = vcmp.eq.s32.totalorder %v4976_v40, %v6056_v61  ;;  %vm1356_vm5 = vcmp.eq.s32.totalorder %v5109_v48, %v5938_v39 }
  0xf4   :  { %4337 = vmatpush1.msk.msra.mxu0 %vm1131_vm6, %v4756_v21  ;;  %4402 = vmatpush1.msk.msra.mxu1 %vm1197_vm7, %v4756_v21  ;;  %vm1166_vm6 = vcmp.eq.s32.totalorder %v4991_v41, %v6046_v11  ;;  %vm1355_vm7 = vcmp.eq.s32.totalorder %v5109_v48, %v5948_v3 }
  0xf5   :  { %4338 = vmatprep.subr.msk.mxu0 %vm1380_vm8, %v4756_v21  ;;  %4403 = vmatprep.subr.msk.mxu1 %vm1190_vm9, %v4756_v21  ;;  %vm1165_vm8 = vcmp.eq.s32.totalorder %v4991_v41, %v6056_v61  ;;  %vm1348_vm9 = vcmp.eq.s32.totalorder %v5124_v49, %v5938_v39 }
  0xf6   :  { %4339 = vmatpush2.msk.msra.mxu0 %vm1379_vm10, %v4756_v21  ;;  %4404 = vmatpush1.msk.msra.mxu1 %vm1189_vm11, %v4756_v21  ;;  %vm1158_vm10 = vcmp.eq.s32.totalorder %v5007_v42, %v6046_v11  ;;  %vm1347_vm11 = vcmp.eq.s32.totalorder %v5124_v49, %v5948_v3 }
  0xf7   :  { %4340 = vmatprep.subr.msk.mxu0 %vm1372_vm12, %v4756_v21  ;;  %4405 = vmatprep.subr.msk.mxu1 %vm1182_vm13, %v4756_v21  ;;  %vm1157_vm12 = vcmp.eq.s32.totalorder %v5007_v42, %v6056_v61  ;;  %vm1340_vm13 = vcmp.eq.s32.totalorder %v5139_v50, %v5938_v39 }
  0xf8   :  { %4341 = vmatpush2.msk.msra.mxu0 %vm1371_vm14, %v4756_v21  ;;  %4406 = vmatpush1.msk.msra.mxu1 %vm1181_vm15, %v4756_v21  ;;  %vm1150_vm14 = vcmp.eq.s32.totalorder %v5022_v43, %v6046_v11  ;;  %vm1339_vm15 = vcmp.eq.s32.totalorder %v5139_v50, %v5948_v3 }
  0xf9   :  { %4342 = vmatprep.subr.msk.mxu0 %vm1364_vm0, %v4756_v21  ;;  %4407 = vmatprep.subr.msk.mxu1 %vm1174_vm2, %v4756_v21  ;;  %vm1149_vm0 = vcmp.eq.s32.totalorder %v5022_v43, %v6056_v61  ;;  %vm1332_vm2 = vcmp.eq.s32.totalorder %v5154_v51, %v5938_v39 }
  0xfa   :  { %4343 = vmatpush2.msk.msra.mxu0 %vm1363_vm3, %v4756_v21  ;;  %4408 = vmatpush1.msk.msra.mxu1 %vm1173_vm4, %v4756_v21  ;;  %vm1142_vm3 = vcmp.eq.s32.totalorder %v5037_v44, %v6046_v11  ;;  %vm1331_vm4 = vcmp.eq.s32.totalorder %v5154_v51, %v5948_v3 }
  0xfb   :  { %4344 = vmatprep.subr.msk.mxu0 %vm1356_vm5, %v4756_v21  ;;  %4409 = vmatprep.subr.msk.mxu1 %vm1166_vm6, %v4756_v21  ;;  %vm1141_vm5 = vcmp.eq.s32.totalorder %v5037_v44, %v6056_v61  ;;  %vm1324_vm6 = vcmp.eq.s32.totalorder %v5169_v52, %v5938_v39 }
  0xfc   :  { %4345 = vmatpush2.msk.msra.mxu0 %vm1355_vm7, %v4756_v21  ;;  %4410 = vmatpush1.msk.msra.mxu1 %vm1165_vm8, %v4756_v21  ;;  %vm1134_vm7 = vcmp.eq.s32.totalorder %v4790_v2, %v6046_v11  ;;  %vm1323_vm8 = vcmp.eq.s32.totalorder %v5169_v52, %v5948_v3 }
  0xfd   :  { %4346 = vmatprep.subr.msk.mxu0 %vm1348_vm9, %v4756_v21  ;;  %4411 = vmatprep.subr.msk.mxu1 %vm1158_vm10, %v4756_v21  ;;  %vm1133_vm9 = vcmp.eq.s32.totalorder %v4790_v2, %v6056_v61  ;;  %vm1316_vm10 = vcmp.eq.s32.totalorder %v5184_v53, %v5938_v39  ;;  %v2237_v5 = vpop.f32.mrf.mxu1 }
  0xfe   :  { %4347 = vmatpush2.msk.msra.mxu0 %vm1347_vm11, %v4756_v21  ;;  %4412 = vmatpush1.msk.msra.mxu1 %vm1157_vm12, %v4756_v21  ;;  %vm1382_vm11 = vcmp.eq.s32.totalorder %v5064_v45, %v6046_v11  ;;  %vm1315_vm12 = vcmp.eq.s32.totalorder %v5184_v53, %v5948_v3 }
  0xff   :  { %4348 = vmatprep.subr.msk.mxu0 %vm1340_vm13, %v4756_v21  ;;  %4413 = vmatprep.subr.msk.mxu1 %vm1150_vm14, %v4756_v21  ;;  %vm1381_vm13 = vcmp.eq.s32.totalorder %v5064_v45, %v6056_v61  ;;  %vm1308_vm14 = vcmp.eq.s32.totalorder %v5199_v54, %v5938_v39  ;;  %v2239_v20 = vpop.f32.mrf.mxu1 }
 0x100   :  { %4349 = vmatpush2.msk.msra.mxu0 %vm1339_vm15, %v4756_v21  ;;  %4414 = vmatpush1.msk.msra.mxu1 %vm1149_vm0, %v4756_v21  ;;  %vm1374_vm15 = vcmp.eq.s32.totalorder %v5079_v46, %v6046_v11  ;;  %vm1307_vm0 = vcmp.eq.s32.totalorder %v5199_v54, %v5948_v3 }
 0x101   :  { %4350 = vmatprep.subr.msk.mxu0 %vm1332_vm2, %v4756_v21  ;;  %4415 = vmatprep.subr.msk.mxu1 %vm1142_vm3, %v4756_v21  ;;  %vm1373_vm2 = vcmp.eq.s32.totalorder %v5079_v46, %v6056_v61  ;;  %vm1300_vm3 = vcmp.eq.s32.totalorder %v5214_v55, %v5938_v39 }
 0x102   :  { %4351 = vmatpush2.msk.msra.mxu0 %vm1331_vm4, %v4756_v21  ;;  %4416 = vmatpush1.msk.msra.mxu1 %vm1141_vm5, %v4756_v21  ;;  %vm1366_vm4 = vcmp.eq.s32.totalorder %v5094_v47, %v6046_v11  ;;  %vm1299_vm5 = vcmp.eq.s32.totalorder %v5214_v55, %v5948_v3 }
 0x103   :  { %4352 = vmatprep.subr.msk.mxu0 %vm1324_vm6, %v4756_v21  ;;  %4417 = vmatprep.subr.msk.mxu1 %vm1134_vm7, %v4756_v21  ;;  %vm1365_vm6 = vcmp.eq.s32.totalorder %v5094_v47, %v6056_v61  ;;  %vm1292_vm7 = vcmp.eq.s32.totalorder %v5229_v56, %v5938_v39 }
 0x104   :  { %4353 = vmatpush2.msk.msra.mxu0 %vm1323_vm8, %v4756_v21  ;;  %4418 = vmatpush1.msk.msra.mxu1 %vm1133_vm9, %v4756_v21  ;;  %vm1358_vm8 = vcmp.eq.s32.totalorder %v5109_v48, %v6046_v11  ;;  %vm1291_vm9 = vcmp.eq.s32.totalorder %v5229_v56, %v5948_v3 }
 0x105   :  { %4354 = vmatprep.subr.msk.mxu0 %vm1316_vm10, %v4756_v21  ;;  %4419 = vmatprep.subr.msk.mxu1 %vm1382_vm11, %v4756_v21  ;;  %vm1357_vm10 = vcmp.eq.s32.totalorder %v5109_v48, %v6056_v61  ;;  %vm1284_vm11 = vcmp.eq.s32.totalorder %v5244_v57, %v5938_v39 }
 0x106   :  { %4355 = vmatpush2.msk.msra.mxu0 %vm1315_vm12, %v4756_v21  ;;  %4420 = vmatpush2.msk.msra.mxu1 %vm1381_vm13, %v4756_v21  ;;  %vm1350_vm12 = vcmp.eq.s32.totalorder %v5124_v49, %v6046_v11  ;;  %vm1283_vm13 = vcmp.eq.s32.totalorder %v5244_v57, %v5948_v3 }
 0x107   :  { %4356 = vmatprep.subr.msk.mxu0 %vm1308_vm14, %v4756_v21  ;;  %4421 = vmatprep.subr.msk.mxu1 %vm1374_vm15, %v4756_v21  ;;  %vm1349_vm14 = vcmp.eq.s32.totalorder %v5124_v49, %v6056_v61  ;;  %vm1276_vm15 = vcmp.eq.s32.totalorder %v5259_v58, %v5938_v39 }
 0x108   :  { %4357 = vmatpush2.msk.msra.mxu0 %vm1307_vm0, %v4756_v21  ;;  %4422 = vmatpush2.msk.msra.mxu1 %vm1373_vm2, %v4756_v21  ;;  %vm1342_vm0 = vcmp.eq.s32.totalorder %v5139_v50, %v6046_v11  ;;  %vm1275_vm2 = vcmp.eq.s32.totalorder %v5259_v58, %v5948_v3 }
 0x109   :  { %4358 = vmatprep.subr.msk.mxu0 %vm1300_vm3, %v4756_v21  ;;  %4423 = vmatprep.subr.msk.mxu1 %vm1366_vm4, %v4756_v21  ;;  %vm1341_vm3 = vcmp.eq.s32.totalorder %v5139_v50, %v6056_v61  ;;  %vm1268_vm4 = vcmp.eq.s32.totalorder %v5274_v59, %v5938_v39 }
 0x10a   :  { %4359 = vmatpush2.msk.msra.mxu0 %vm1299_vm5, %v4756_v21  ;;  %4424 = vmatpush2.msk.msra.mxu1 %vm1365_vm6, %v4756_v21  ;;  %vm1334_vm5 = vcmp.eq.s32.totalorder %v5154_v51, %v6046_v11  ;;  %vm1267_vm6 = vcmp.eq.s32.totalorder %v5274_v59, %v5948_v3 }
 0x10b   :  { %4360 = vmatprep.subr.msk.mxu0 %vm1292_vm7, %v4756_v21  ;;  %4425 = vmatprep.subr.msk.mxu1 %vm1358_vm8, %v4756_v21  ;;  %vm1333_vm7 = vcmp.eq.s32.totalorder %v5154_v51, %v6056_v61  ;;  %vm1260_vm8 = vcmp.eq.s32.totalorder %v5289_v60, %v5938_v39 }
 0x10c   :  { %4361 = vmatpush2.msk.msra.mxu0 %vm1291_vm9, %v4756_v21  ;;  %4426 = vmatpush2.msk.msra.mxu1 %vm1357_vm10, %v4756_v21  ;;  %vm1326_vm9 = vcmp.eq.s32.totalorder %v5169_v52, %v6046_v11  ;;  %vm1259_vm10 = vcmp.eq.s32.totalorder %v5289_v60, %v5948_v3 }
 0x10d   :  { %4362 = vmatprep.subr.msk.mxu0 %vm1284_vm11, %v4756_v21  ;;  %4427 = vmatprep.subr.msk.mxu1 %vm1350_vm12, %v4756_v21  ;;  %vm1325_vm11 = vcmp.eq.s32.totalorder %v5169_v52, %v6056_v61  ;;  %vm1318_vm12 = vcmp.eq.s32.totalorder %v5184_v53, %v6046_v11 }
 0x10e   :  { %4363 = vmatpush2.msk.msra.mxu0 %vm1283_vm13, %v4756_v21  ;;  %4428 = vmatpush2.msk.msra.mxu1 %vm1349_vm14, %v4756_v21  ;;  %vm1446_vm13 = vcmp.eq.s32.totalorder %v4801_v10, %v6046_v11  ;;  %vm1317_vm14 = vcmp.eq.s32.totalorder %v5184_v53, %v6056_v61 }
 0x10f   :  { %4364 = vmatprep.subr.msk.mxu0 %vm1276_vm15, %v4756_v21  ;;  %4429 = vmatprep.subr.msk.mxu1 %vm1342_vm0, %v4756_v21  ;;  %vm1445_vm15 = vcmp.eq.s32.totalorder %v4801_v10, %v6056_v61  ;;  %vm1310_vm0 = vcmp.eq.s32.totalorder %v5199_v54, %v6046_v11 }
 0x110   :  { %4365 = vmatpush2.msk.msra.mxu0 %vm1275_vm2, %v4756_v21  ;;  %4430 = vmatpush2.msk.msra.mxu1 %vm1341_vm3, %v4756_v21  ;;  %vm1438_vm2 = vcmp.eq.s32.totalorder %v4809_v13, %v6046_v11  ;;  %vm1309_vm3 = vcmp.eq.s32.totalorder %v5199_v54, %v6056_v61 }
 0x111   :  { %4366 = vmatprep.subr.msk.mxu0 %vm1268_vm4, %v4756_v21  ;;  %4431 = vmatprep.subr.msk.mxu1 %vm1334_vm5, %v4756_v21  ;;  %vm1437_vm4 = vcmp.eq.s32.totalorder %v4809_v13, %v6056_v61  ;;  %vm1302_vm5 = vcmp.eq.s32.totalorder %v5214_v55, %v6046_v11 }
 0x112   :  { %4367 = vmatpush2.msk.msra.mxu0 %vm1267_vm6, %v4756_v21  ;;  %4432 = vmatpush2.msk.msra.mxu1 %vm1333_vm7, %v4756_v21  ;;  %vm1430_vm6 = vcmp.eq.s32.totalorder %v4823_v17, %v6046_v11  ;;  %vm1301_vm7 = vcmp.eq.s32.totalorder %v5214_v55, %v6056_v61 }
 0x113   :  { %4368 = vmatprep.subr.msk.mxu0 %vm1260_vm8, %v4756_v21  ;;  %4433 = vmatprep.subr.msk.mxu1 %vm1326_vm9, %v4756_v21  ;;  %vm1429_vm8 = vcmp.eq.s32.totalorder %v4823_v17, %v6056_v61  ;;  %vm1294_vm9 = vcmp.eq.s32.totalorder %v5229_v56, %v6046_v11 }
 0x114   :  { %4369 = vmatpush2.msk.msra.mxu0 %vm1259_vm10, %v4756_v21  ;;  %2740 = vmatprep.mubr.f32.mxu0 %v6355_v62  ;;  %vm1422_vm10 = vcmp.eq.s32.totalorder %v4829_v19, %v6046_v11 }
 0x115   :  { %4434 = vmatpush2.msk.msra.mxu1 %vm1325_vm11, %v4756_v21  ;;  %2741 = vmatmul.mubr.f32.vlgmr.msra.gmra.mxu0 %v6333_v34  ;;  %vm1293_vm11 = vcmp.eq.s32.totalorder %v5229_v56, %v6056_v61 }
 0x116   :  { %4435 = vmatprep.subr.msk.mxu1 %vm1318_vm12, %v4756_v21  ;;  %4451 = vmatprep.subr.msk.mxu0 %vm1446_vm13, %v4756_v21  ;;  %vm1421_vm12 = vcmp.eq.s32.totalorder %v4829_v19, %v6056_v61  ;;  %vm1286_vm13 = vcmp.eq.s32.totalorder %v5244_v57, %v6046_v11 }
 0x117   :  { %4436 = vmatpush2.msk.msra.mxu1 %vm1317_vm14, %v4756_v21  ;;  %4452 = vmatpush1.msk.msra.mxu0 %vm1445_vm15, %v4756_v21  ;;  %vm1414_vm14 = vcmp.eq.s32.totalorder %v4859_v24, %v6046_v11  ;;  %vm1285_vm15 = vcmp.eq.s32.totalorder %v5244_v57, %v6056_v61 }
 0x118   :  { %4437 = vmatprep.subr.msk.mxu1 %vm1310_vm0, %v4756_v21  ;;  %4453 = vmatprep.subr.msk.mxu0 %vm1438_vm2, %v4756_v21  ;;  %vm1413_vm0 = vcmp.eq.s32.totalorder %v4859_v24, %v6056_v61  ;;  %vm1278_vm2 = vcmp.eq.s32.totalorder %v5259_v58, %v6046_v11 }
 0x119   :  { %4438 = vmatpush2.msk.msra.mxu1 %vm1309_vm3, %v4756_v21  ;;  %4454 = vmatpush1.msk.msra.mxu0 %vm1437_vm4, %v4756_v21  ;;  %vm1406_vm3 = vcmp.eq.s32.totalorder %v4877_v27, %v6046_v11  ;;  %vm1277_vm4 = vcmp.eq.s32.totalorder %v5259_v58, %v6056_v61 }
 0x11a   :  { %4439 = vmatprep.subr.msk.mxu1 %vm1302_vm5, %v4756_v21  ;;  %4455 = vmatprep.subr.msk.mxu0 %vm1430_vm6, %v4756_v21  ;;  %vm1405_vm5 = vcmp.eq.s32.totalorder %v4877_v27, %v6056_v61  ;;  %vm1270_vm6 = vcmp.eq.s32.totalorder %v5274_v59, %v6046_v11 }
 0x11b   :  { %4440 = vmatpush2.msk.msra.mxu1 %vm1301_vm7, %v4756_v21  ;;  %4456 = vmatpush1.msk.msra.mxu0 %vm1429_vm8, %v4756_v21  ;;  %vm1398_vm7 = vcmp.eq.s32.totalorder %v4895_v30, %v6046_v11  ;;  %vm1269_vm8 = vcmp.eq.s32.totalorder %v5274_v59, %v6056_v61 }
 0x11c   :  { %4441 = vmatprep.subr.msk.mxu1 %vm1294_vm9, %v4756_v21  ;;  %4457 = vmatprep.subr.msk.mxu0 %vm1422_vm10, %v4756_v21  ;;  %vm1397_vm9 = vcmp.eq.s32.totalorder %v4895_v30, %v6056_v61  ;;  %vm1262_vm10 = vcmp.eq.s32.totalorder %v5289_v60, %v6046_v11 }
 0x11d   :  { %4442 = vmatpush2.msk.msra.mxu1 %vm1293_vm11, %v4756_v21  ;;  %4458 = vmatpush1.msk.msra.mxu0 %vm1421_vm12, %v4756_v21  ;;  %vm1390_vm11 = vcmp.eq.s32.totalorder %v4915_v33, %v6046_v11  ;;  %vm1261_vm12 = vcmp.eq.s32.totalorder %v5289_v60, %v6056_v61 }
 0x11e   :  { %4443 = vmatprep.subr.msk.mxu1 %vm1286_vm13, %v4756_v21  ;;  %4459 = vmatprep.subr.msk.mxu0 %vm1414_vm14, %v4756_v21  ;;  %vm1389_vm13 = vcmp.eq.s32.totalorder %v4915_v33, %v6056_v61  ;;  %vm1256_vm14 = vcmp.eq.s32.totalorder %v4798_v9, %v6451_v4 }
 0x11f   :  { %4444 = vmatpush2.msk.msra.mxu1 %vm1285_vm15, %v4756_v21  ;;  %4460 = vmatpush1.msk.msra.mxu0 %vm1413_vm0, %v4756_v21  ;;  %vm1448_vm15 = vcmp.eq.s32.totalorder %v4801_v10, %v6451_v4  ;;  %vm1255_vm0 = vcmp.eq.s32.totalorder %v4798_v9, %v6461_v14 }
 0x120   :  { %4445 = vmatprep.subr.msk.mxu1 %vm1278_vm2, %v4756_v21  ;;  %4461 = vmatprep.subr.msk.mxu0 %vm1406_vm3, %v4756_v21  ;;  %vm1447_vm2 = vcmp.eq.s32.totalorder %v4801_v10, %v6461_v14  ;;  %vm1248_vm3 = vcmp.eq.s32.totalorder %v4806_v12, %v6451_v4 }
 0x121   :  { %4446 = vmatpush2.msk.msra.mxu1 %vm1277_vm4, %v4756_v21  ;;  %4462 = vmatpush1.msk.msra.mxu0 %vm1405_vm5, %v4756_v21  ;;  %vm1440_vm4 = vcmp.eq.s32.totalorder %v4809_v13, %v6451_v4  ;;  %vm1247_vm5 = vcmp.eq.s32.totalorder %v4806_v12, %v6461_v14 }
 0x122   :  { %4447 = vmatprep.subr.msk.mxu1 %vm1270_vm6, %v4756_v21  ;;  %4463 = vmatprep.subr.msk.mxu0 %vm1398_vm7, %v4756_v21  ;;  %vm1439_vm6 = vcmp.eq.s32.totalorder %v4809_v13, %v6461_v14  ;;  %vm1240_vm7 = vcmp.eq.s32.totalorder %v4820_v16, %v6451_v4 }
 0x123   :  { %4448 = vmatpush2.msk.msra.mxu1 %vm1269_vm8, %v4756_v21  ;;  %4464 = vmatpush1.msk.msra.mxu0 %vm1397_vm9, %v4756_v21  ;;  %vm1432_vm8 = vcmp.eq.s32.totalorder %v4823_v17, %v6451_v4  ;;  %vm1239_vm9 = vcmp.eq.s32.totalorder %v4820_v16, %v6461_v14 }
 0x124   :  { %4449 = vmatprep.subr.msk.mxu1 %vm1262_vm10, %v4756_v21  ;;  %4465 = vmatprep.subr.msk.mxu0 %vm1390_vm11, %v4756_v21  ;;  %vm1431_vm10 = vcmp.eq.s32.totalorder %v4823_v17, %v6461_v14  ;;  %vm1232_vm11 = vcmp.eq.s32.totalorder %v4826_v18, %v6451_v4 }
 0x125   :  { %4450 = vmatpush2.msk.msra.mxu1 %vm1261_vm12, %v4756_v21  ;;  %2882 = vmatprep.mubr.f32.mxu1 %v6355_v62  ;;  %vm1424_vm12 = vcmp.eq.s32.totalorder %v4829_v19, %v6451_v4 }
 0x126   :  { %4466 = vmatpush1.msk.msra.mxu0 %vm1389_vm13, %v4756_v21  ;;  %2953 = vmatprep.mubr.f32.mxu0 %v4755_v1  ;;  %vm1231_vm13 = vcmp.eq.s32.totalorder %v4826_v18, %v6461_v14 }
 0x127   :  { %2883 = vmatmul.mubr.f32.vlgmr.msra.gmra.mxu1 %v6333_v34  ;;  %4467 = vmatmul.mubr.msk.f32.vlgmr.msra.gmra.mxu0 %vm2097_vm1, %v6066_v32 }
 0x128   :  { %4468 = vmatprep.subr.msk.mxu0 %vm1256_vm14, %v4756_v21  ;;  %4532 = vmatprep.subr.msk.mxu1 %vm1448_vm15, %v4756_v21  ;;  %vm1423_vm14 = vcmp.eq.s32.totalorder %v4829_v19, %v6461_v14  ;;  %vm1224_vm15 = vcmp.eq.s32.totalorder %v4848_v22, %v6451_v4 }
 0x129   :  { %4469 = vmatpush1.msk.msra.mxu0 %vm1255_vm0, %v4756_v21  ;;  %4533 = vmatpush1.msk.msra.mxu1 %vm1447_vm2, %v4756_v21  ;;  %vm1416_vm0 = vcmp.eq.s32.totalorder %v4859_v24, %v6451_v4  ;;  %vm1223_vm2 = vcmp.eq.s32.totalorder %v4848_v22, %v6461_v14 }
 0x12a   :  { %4470 = vmatprep.subr.msk.mxu0 %vm1248_vm3, %v4756_v21  ;;  %4534 = vmatprep.subr.msk.mxu1 %vm1440_vm4, %v4756_v21  ;;  %vm1415_vm3 = vcmp.eq.s32.totalorder %v4859_v24, %v6461_v14  ;;  %vm1216_vm4 = vcmp.eq.s32.totalorder %v4868_v25, %v6451_v4 }
 0x12b   :  { %4471 = vmatpush1.msk.msra.mxu0 %vm1247_vm5, %v4756_v21  ;;  %4535 = vmatpush1.msk.msra.mxu1 %vm1439_vm6, %v4756_v21  ;;  %vm1408_vm5 = vcmp.eq.s32.totalorder %v4877_v27, %v6451_v4  ;;  %vm1215_vm6 = vcmp.eq.s32.totalorder %v4868_v25, %v6461_v14 }
 0x12c   :  { %4472 = vmatprep.subr.msk.mxu0 %vm1240_vm7, %v4756_v21  ;;  %4536 = vmatprep.subr.msk.mxu1 %vm1432_vm8, %v4756_v21  ;;  %vm1407_vm7 = vcmp.eq.s32.totalorder %v4877_v27, %v6461_v14  ;;  %vm1208_vm8 = vcmp.eq.s32.totalorder %v4892_v29, %v6451_v4 }
 0x12d   :  { %4473 = vmatpush1.msk.msra.mxu0 %vm1239_vm9, %v4756_v21  ;;  %4537 = vmatpush1.msk.msra.mxu1 %vm1431_vm10, %v4756_v21  ;;  %v2166_v7 = vpop.f32.mrf.mxu0  ;;  %vm1400_vm9 = vcmp.eq.s32.totalorder %v4895_v30, %v6451_v4  ;;  %vm1207_vm10 = vcmp.eq.s32.totalorder %v4892_v29, %v6461_v14 }
 0x12e   :  { %4474 = vmatprep.subr.msk.mxu0 %vm1232_vm11, %v4756_v21  ;;  %4538 = vmatprep.subr.msk.mxu1 %vm1424_vm12, %v4756_v21  ;;  %v2238_v15 = vadd.f32 %v2237_v5, %v2166_v7  ;;  %vm1399_vm11 = vcmp.eq.s32.totalorder %v4895_v30, %v6461_v14  ;;  %vm1200_vm12 = vcmp.eq.s32.totalorder %v4904_v31, %v6451_v4 }
 0x12f   :  { %4475 = vmatpush1.msk.msra.mxu0 %vm1231_vm13, %v4756_v21  ;;  %4539 = vmatpush1.msk.msra.mxu1 %vm1423_vm14, %v4756_v21  ;;  %v2168_v23 = vpop.f32.mrf.mxu0  ;;  %vm1392_vm13 = vcmp.eq.s32.totalorder %v4915_v33, %v6451_v4  ;;  %vm1199_vm14 = vcmp.eq.s32.totalorder %v4904_v31, %v6461_v14 }
 0x130   :  { %4476 = vmatprep.subr.msk.mxu0 %vm1224_vm15, %v4756_v21  ;;  %4540 = vmatprep.subr.msk.mxu1 %vm1416_vm0, %v4756_v21  ;;  %3244 = vst [vmem:[#allocation8] sm:$0x7] %v2238_v15  ;;  %v2240_v26 = vadd.f32 %v2239_v20, %v2168_v23  ;;  %vm1391_vm15 = vcmp.eq.s32.totalorder %v4915_v33, %v6461_v14 }
 0x131   :  { %4477 = vmatpush1.msk.msra.mxu0 %vm1223_vm2, %v4756_v21  ;;  %4541 = vmatpush1.msk.msra.mxu1 %vm1415_vm3, %v4756_v21  ;;  %vm1192_vm0 = vcmp.eq.s32.totalorder %v4938_v35, %v6451_v4  ;;  %vm1258_vm2 = vcmp.eq.s32.totalorder %v4798_v9, %v6560_v28  ;;  %vm1191_vm3 = vcmp.eq.s32.totalorder %v4938_v35, %v6461_v14 }
 0x132   :  { %4478 = vmatprep.subr.msk.mxu0 %vm1216_vm4, %v4756_v21  ;;  %4542 = vmatprep.subr.msk.mxu1 %vm1408_vm5, %v4756_v21  ;;  %3245 = vst [vmem:[#allocation8 + $0x8] sm:$0x7] %v2240_v26  ;;  %vm1257_vm4 = vcmp.eq.s32.totalorder %v4798_v9, %v6570_v63  ;;  %vm1184_vm5 = vcmp.eq.s32.totalorder %v4961_v38, %v6451_v4 }
 0x133   :  { %4479 = vmatpush1.msk.msra.mxu0 %vm1215_vm6, %v4756_v21  ;;  %4543 = vmatpush1.msk.msra.mxu1 %vm1407_vm7, %v4756_v21  ;;  %vm1250_vm6 = vcmp.eq.s32.totalorder %v4806_v12, %v6560_v28  ;;  %vm1183_vm7 = vcmp.eq.s32.totalorder %v4961_v38, %v6461_v14 }
 0x134   :  { %4480 = vmatprep.subr.msk.mxu0 %vm1208_vm8, %v4756_v21  ;;  %4544 = vmatprep.subr.msk.mxu1 %vm1400_vm9, %v4756_v21  ;;  %vm1249_vm8 = vcmp.eq.s32.totalorder %v4806_v12, %v6570_v63  ;;  %vm1176_vm9 = vcmp.eq.s32.totalorder %v4976_v40, %v6451_v4 }
 0x135   :  { %4481 = vmatpush1.msk.msra.mxu0 %vm1207_vm10, %v4756_v21  ;;  %4545 = vmatpush1.msk.msra.mxu1 %vm1399_vm11, %v4756_v21  ;;  %vm1242_vm10 = vcmp.eq.s32.totalorder %v4820_v16, %v6560_v28  ;;  %vm1175_vm11 = vcmp.eq.s32.totalorder %v4976_v40, %v6461_v14 }
 0x136   :  { %4482 = vmatprep.subr.msk.mxu0 %vm1200_vm12, %v4756_v21  ;;  %4546 = vmatprep.subr.msk.mxu1 %vm1392_vm13, %v4756_v21  ;;  %vm1241_vm12 = vcmp.eq.s32.totalorder %v4820_v16, %v6570_v63  ;;  %vm1168_vm13 = vcmp.eq.s32.totalorder %v4991_v41, %v6451_v4 }
 0x137   :  { %4483 = vmatpush1.msk.msra.mxu0 %vm1199_vm14, %v4756_v21  ;;  %4547 = vmatpush1.msk.msra.mxu1 %vm1391_vm15, %v4756_v21  ;;  %vm1234_vm14 = vcmp.eq.s32.totalorder %v4826_v18, %v6560_v28  ;;  %vm1167_vm15 = vcmp.eq.s32.totalorder %v4991_v41, %v6461_v14 }
 0x138   :  { %3095 = vmatprep.mubr.f32.mxu1 %v4755_v1  ;;  %4484 = vmatprep.subr.msk.mxu0 %vm1192_vm0, %v4756_v21  ;;  %vm1233_vm0 = vcmp.eq.s32.totalorder %v4826_v18, %v6570_v63 }
 0x139   :  { %4548 = vmatmul.mubr.msk.f32.vlgmr.msra.gmra.mxu1 %vm2097_vm1, %v6066_v32  ;;  %4549 = vmatprep.subr.msk.mxu1 %vm1258_vm2, %v4756_v21  ;;  %vm1160_vm2 = vcmp.eq.s32.totalorder %v5007_v42, %v6451_v4 }
 0x13a   :  { %4485 = vmatpush1.msk.msra.mxu0 %vm1191_vm3, %v4756_v21  ;;  %4550 = vmatpush1.msk.msra.mxu1 %vm1257_vm4, %v4756_v21  ;;  %vm1226_vm3 = vcmp.eq.s32.totalorder %v4848_v22, %v6560_v28  ;;  %vm1159_vm4 = vcmp.eq.s32.totalorder %v5007_v42, %v6461_v14 }
 0x13b   :  { %4486 = vmatprep.subr.msk.mxu0 %vm1184_vm5, %v4756_v21  ;;  %4551 = vmatprep.subr.msk.mxu1 %vm1250_vm6, %v4756_v21  ;;  %vm1225_vm5 = vcmp.eq.s32.totalorder %v4848_v22, %v6570_v63  ;;  %vm1152_vm6 = vcmp.eq.s32.totalorder %v5022_v43, %v6451_v4 }
 0x13c   :  { %4487 = vmatpush1.msk.msra.mxu0 %vm1183_vm7, %v4756_v21  ;;  %4552 = vmatpush1.msk.msra.mxu1 %vm1249_vm8, %v4756_v21  ;;  %vm1218_vm7 = vcmp.eq.s32.totalorder %v4868_v25, %v6560_v28  ;;  %vm1151_vm8 = vcmp.eq.s32.totalorder %v5022_v43, %v6461_v14 }
 0x13d   :  { %4488 = vmatprep.subr.msk.mxu0 %vm1176_vm9, %v4756_v21  ;;  %4553 = vmatprep.subr.msk.mxu1 %vm1242_vm10, %v4756_v21  ;;  %vm1217_vm9 = vcmp.eq.s32.totalorder %v4868_v25, %v6570_v63  ;;  %vm1144_vm10 = vcmp.eq.s32.totalorder %v5037_v44, %v6451_v4 }
 0x13e   :  { %4489 = vmatpush1.msk.msra.mxu0 %vm1175_vm11, %v4756_v21  ;;  %4554 = vmatpush1.msk.msra.mxu1 %vm1241_vm12, %v4756_v21  ;;  %vm1210_vm11 = vcmp.eq.s32.totalorder %v4892_v29, %v6560_v28  ;;  %vm1143_vm12 = vcmp.eq.s32.totalorder %v5037_v44, %v6461_v14 }
 0x13f   :  { %4490 = vmatprep.subr.msk.mxu0 %vm1168_vm13, %v4756_v21  ;;  %v2308_v9 = vpop.f32.mrf.mxu1  ;;  %4555 = vmatprep.subr.msk.mxu1 %vm1234_vm14, %v4756_v21  ;;  %v2379_v12 = vpop.f32.mrf.mxu0  ;;  %vm1209_vm13 = vcmp.eq.s32.totalorder %v4892_v29, %v6570_v63  ;;  %vm1136_vm14 = vcmp.eq.s32.totalorder %v4790_v2, %v6451_v4 }
 0x140   :  { %4491 = vmatpush1.msk.msra.mxu0 %vm1167_vm15, %v4756_v21  ;;  %4556 = vmatpush1.msk.msra.mxu1 %vm1233_vm0, %v4756_v21  ;;  %v2380_v16 = vadd.f32 %v2379_v12, %v2308_v9  ;;  %vm1202_vm15 = vcmp.eq.s32.totalorder %v4904_v31, %v6560_v28  ;;  %vm1135_vm0 = vcmp.eq.s32.totalorder %v4790_v2, %v6461_v14 }
 0x141   :  { %4492 = vmatprep.subr.msk.mxu0 %vm1160_vm2, %v4756_v21  ;;  %v2310_v18 = vpop.f32.mrf.mxu1  ;;  %4557 = vmatprep.subr.msk.mxu1 %vm1226_vm3, %v4756_v21  ;;  %v2381_v22 = vpop.f32.mrf.mxu0  ;;  %vm1201_vm2 = vcmp.eq.s32.totalorder %v4904_v31, %v6570_v63  ;;  %vm1384_vm3 = vcmp.eq.s32.totalorder %v5064_v45, %v6451_v4 }
 0x142   :  { %4493 = vmatpush1.msk.msra.mxu0 %vm1159_vm4, %v4756_v21  ;;  %4558 = vmatpush1.msk.msra.mxu1 %vm1225_vm5, %v4756_v21  ;;  %3246 = vst [vmem:[#allocation8 + $0x10] sm:$0x7] %v2380_v16  ;;  %v2382_v36 = vadd.f32 %v2381_v22, %v2310_v18  ;;  %vm1194_vm4 = vcmp.eq.s32.totalorder %v4938_v35, %v6560_v28 }
 0x143   :  { %4494 = vmatprep.subr.msk.mxu0 %vm1152_vm6, %v4756_v21  ;;  %4559 = vmatprep.subr.msk.mxu1 %vm1218_vm7, %v4756_v21  ;;  %vm1383_vm5 = vcmp.eq.s32.totalorder %v5064_v45, %v6461_v14  ;;  %vm1193_vm6 = vcmp.eq.s32.totalorder %v4938_v35, %v6570_v63  ;;  %vm1376_vm7 = vcmp.eq.s32.totalorder %v5079_v46, %v6451_v4 }
 0x144   :  { %4495 = vmatpush1.msk.msra.mxu0 %vm1151_vm8, %v4756_v21  ;;  %4560 = vmatpush1.msk.msra.mxu1 %vm1217_vm9, %v4756_v21  ;;  %3247 = vst [vmem:[#allocation8 + $0x18] sm:$0x7] %v2382_v36  ;;  %vm1186_vm8 = vcmp.eq.s32.totalorder %v4961_v38, %v6560_v28  ;;  %vm1375_vm9 = vcmp.eq.s32.totalorder %v5079_v46, %v6461_v14 }
 0x145   :  { %4496 = vmatprep.subr.msk.mxu0 %vm1144_vm10, %v4756_v21  ;;  %4561 = vmatprep.subr.msk.mxu1 %vm1210_vm11, %v4756_v21  ;;  %vm1185_vm10 = vcmp.eq.s32.totalorder %v4961_v38, %v6570_v63  ;;  %vm1368_vm11 = vcmp.eq.s32.totalorder %v5094_v47, %v6451_v4  ;;  %v4659_v38 = vld [vmem:[#allocation2 + $0x8] sm:$0x1f] }
 0x146   :  { %4497 = vmatpush1.msk.msra.mxu0 %vm1143_vm12, %v4756_v21  ;;  %4562 = vmatpush1.msk.msra.mxu1 %vm1209_vm13, %v4756_v21  ;;  %vm1178_vm12 = vcmp.eq.s32.totalorder %v4976_v40, %v6560_v28  ;;  %vm1367_vm13 = vcmp.eq.s32.totalorder %v5094_v47, %v6461_v14 }
 0x147   :  { %4498 = vmatprep.subr.msk.mxu0 %vm1136_vm14, %v4756_v21  ;;  %4563 = vmatprep.subr.msk.mxu1 %vm1202_vm15, %v4756_v21  ;;  %vm1177_vm14 = vcmp.eq.s32.totalorder %v4976_v40, %v6570_v63  ;;  %vm1360_vm15 = vcmp.eq.s32.totalorder %v5109_v48, %v6451_v4  ;;  %v3293_v40 = vrot.slane %v4659_v38, 4 }
 0x148   :  { %4499 = vmatpush1.msk.msra.mxu0 %vm1135_vm0, %v4756_v21  ;;  %4564 = vmatpush1.msk.msra.mxu1 %vm1201_vm2, %v4756_v21  ;;  %vm1170_vm0 = vcmp.eq.s32.totalorder %v4991_v41, %v6560_v28  ;;  %vm1359_vm2 = vcmp.eq.s32.totalorder %v5109_v48, %v6461_v14 }
 0x149   :  { %4500 = vmatprep.subr.msk.mxu0 %vm1384_vm3, %v4756_v21  ;;  %4565 = vmatprep.subr.msk.mxu1 %vm1194_vm4, %v4756_v21  ;;  %vm1169_vm3 = vcmp.eq.s32.totalorder %v4991_v41, %v6570_v63  ;;  %vm1352_vm4 = vcmp.eq.s32.totalorder %v5124_v49, %v6451_v4  ;;  %v4660_v41 = vld [vmem:[#allocation2 + $0x10] sm:$0x1f]  ;;  %3309 = vst [vmem:[#allocation8 + $0x48] ss:$-60 sps:$4 sm:$0xc1] %v3293_v40  }
 0x14a   :  { %4501 = vmatpush2.msk.msra.mxu0 %vm1383_vm5, %v4756_v21  ;;  %4566 = vmatpush1.msk.msra.mxu1 %vm1193_vm6, %v4756_v21  ;;  %vm1162_vm5 = vcmp.eq.s32.totalorder %v5007_v42, %v6560_v28  ;;  %vm1351_vm6 = vcmp.eq.s32.totalorder %v5124_v49, %v6461_v14 }
 0x14b   :  { %4502 = vmatprep.subr.msk.mxu0 %vm1376_vm7, %v4756_v21  ;;  %4567 = vmatprep.subr.msk.mxu1 %vm1186_vm8, %v4756_v21  ;;  %vm1161_vm7 = vcmp.eq.s32.totalorder %v5007_v42, %v6570_v63  ;;  %vm1344_vm8 = vcmp.eq.s32.totalorder %v5139_v50, %v6451_v4  ;;  %v3294_v42 = vrot.slane %v4660_v41, 4 }
 0x14c   :  { %4503 = vmatpush2.msk.msra.mxu0 %vm1375_vm9, %v4756_v21  ;;  %4568 = vmatpush1.msk.msra.mxu1 %vm1185_vm10, %v4756_v21  ;;  %vm1154_vm9 = vcmp.eq.s32.totalorder %v5022_v43, %v6560_v28  ;;  %vm1343_vm10 = vcmp.eq.s32.totalorder %v5139_v50, %v6461_v14 }
 0x14d   :  { %4504 = vmatprep.subr.msk.mxu0 %vm1368_vm11, %v4756_v21  ;;  %4569 = vmatprep.subr.msk.mxu1 %vm1178_vm12, %v4756_v21  ;;  %vm1153_vm11 = vcmp.eq.s32.totalorder %v5022_v43, %v6570_v63  ;;  %vm1336_vm12 = vcmp.eq.s32.totalorder %v5154_v51, %v6451_v4  ;;  %v4661_v43 = vld [vmem:[#allocation2 + $0x18] sm:$0x1f]  ;;  %3310 = vst [vmem:[#allocation8 + $0x50] ss:$-60 sps:$4 sm:$0xc1] %v3294_v42  }
 0x14e   :  { %4505 = vmatpush2.msk.msra.mxu0 %vm1367_vm13, %v4756_v21  ;;  %4570 = vmatpush1.msk.msra.mxu1 %vm1177_vm14, %v4756_v21  ;;  %vm1146_vm13 = vcmp.eq.s32.totalorder %v5037_v44, %v6560_v28  ;;  %vm1335_vm14 = vcmp.eq.s32.totalorder %v5154_v51, %v6461_v14 }
 0x14f   :  { %4506 = vmatprep.subr.msk.mxu0 %vm1360_vm15, %v4756_v21  ;;  %4571 = vmatprep.subr.msk.mxu1 %vm1170_vm0, %v4756_v21  ;;  %vm1145_vm15 = vcmp.eq.s32.totalorder %v5037_v44, %v6570_v63  ;;  %vm1328_vm0 = vcmp.eq.s32.totalorder %v5169_v52, %v6451_v4  ;;  %v3295_v44 = vrot.slane %v4661_v43, 4 }
 0x150   :  { %4507 = vmatpush2.msk.msra.mxu0 %vm1359_vm2, %v4756_v21  ;;  %4572 = vmatpush1.msk.msra.mxu1 %vm1169_vm3, %v4756_v21  ;;  %vm1138_vm2 = vcmp.eq.s32.totalorder %v4790_v2, %v6560_v28  ;;  %vm1327_vm3 = vcmp.eq.s32.totalorder %v5169_v52, %v6461_v14 }
 0x151   :  { %4508 = vmatprep.subr.msk.mxu0 %vm1352_vm4, %v4756_v21  ;;  %4573 = vmatprep.subr.msk.mxu1 %vm1162_vm5, %v4756_v21  ;;  %vm1137_vm4 = vcmp.eq.s32.totalorder %v4790_v2, %v6570_v63  ;;  %vm1320_vm5 = vcmp.eq.s32.totalorder %v5184_v53, %v6451_v4  ;;  %v4657_v2 = vld [vmem:[#allocation7 + $0x8] sm:$0x7]  ;;  %3311 = vst [vmem:[#allocation8 + $0x58] ss:$-60 sps:$4 sm:$0xc1] %v3295_v44  }
 0x152   :  { %4509 = vmatpush2.msk.msra.mxu0 %vm1351_vm6, %v4756_v21  ;;  %4574 = vmatpush1.msk.msra.mxu1 %vm1161_vm7, %v4756_v21  ;;  %vm1386_vm6 = vcmp.eq.s32.totalorder %v5064_v45, %v6560_v28  ;;  %vm1319_vm7 = vcmp.eq.s32.totalorder %v5184_v53, %v6461_v14 }
 0x153   :  { %4510 = vmatprep.subr.msk.mxu0 %vm1344_vm8, %v4756_v21  ;;  %4575 = vmatprep.subr.msk.mxu1 %vm1154_vm9, %v4756_v21  ;;  %vm1385_vm8 = vcmp.eq.s32.totalorder %v5064_v45, %v6570_v63  ;;  %vm1312_vm9 = vcmp.eq.s32.totalorder %v5199_v54, %v6451_v4  ;;  %v4662_v45 = vld [vmem:[#allocation2 + $0x20] sm:$0x1f] }
 0x154   :  { %4511 = vmatpush2.msk.msra.mxu0 %vm1343_vm10, %v4756_v21  ;;  %4576 = vmatpush1.msk.msra.mxu1 %vm1153_vm11, %v4756_v21  ;;  %vm1378_vm10 = vcmp.eq.s32.totalorder %v5079_v46, %v6560_v28  ;;  %vm1311_vm11 = vcmp.eq.s32.totalorder %v5199_v54, %v6461_v14 }
 0x155   :  { %4512 = vmatprep.subr.msk.mxu0 %vm1336_vm12, %v4756_v21  ;;  %4577 = vmatprep.subr.msk.mxu1 %vm1146_vm13, %v4756_v21  ;;  %vm1377_vm12 = vcmp.eq.s32.totalorder %v5079_v46, %v6570_v63  ;;  %vm1304_vm13 = vcmp.eq.s32.totalorder %v5214_v55, %v6451_v4  ;;  %v3296_v46 = vrot.slane %v4662_v45, 4 }
 0x156   :  { %4513 = vmatpush2.msk.msra.mxu0 %vm1335_vm14, %v4756_v21  ;;  %4578 = vmatpush1.msk.msra.mxu1 %vm1145_vm15, %v4756_v21  ;;  %vm1370_vm14 = vcmp.eq.s32.totalorder %v5094_v47, %v6560_v28  ;;  %vm1303_vm15 = vcmp.eq.s32.totalorder %v5214_v55, %v6461_v14 }
 0x157   :  { %4514 = vmatprep.subr.msk.mxu0 %vm1328_vm0, %v4756_v21  ;;  %4579 = vmatprep.subr.msk.mxu1 %vm1138_vm2, %v4756_v21  ;;  %vm1369_vm0 = vcmp.eq.s32.totalorder %v5094_v47, %v6570_v63  ;;  %vm1296_vm2 = vcmp.eq.s32.totalorder %v5229_v56, %v6451_v4  ;;  %v4663_v47 = vld [vmem:[#allocation2 + $0x28] sm:$0x1f]  ;;  %3312 = vst [vmem:[#allocation8 + $0x60] ss:$-60 sps:$4 sm:$0xc1] %v3296_v46  }
 0x158   :  { %4515 = vmatpush2.msk.msra.mxu0 %vm1327_vm3, %v4756_v21  ;;  %4580 = vmatpush1.msk.msra.mxu1 %vm1137_vm4, %v4756_v21  ;;  %vm1362_vm3 = vcmp.eq.s32.totalorder %v5109_v48, %v6560_v28  ;;  %vm1295_vm4 = vcmp.eq.s32.totalorder %v5229_v56, %v6461_v14 }
 0x159   :  { %4516 = vmatprep.subr.msk.mxu0 %vm1320_vm5, %v4756_v21  ;;  %4581 = vmatprep.subr.msk.mxu1 %vm1386_vm6, %v4756_v21  ;;  %vm1361_vm5 = vcmp.eq.s32.totalorder %v5109_v48, %v6570_v63  ;;  %vm1288_vm6 = vcmp.eq.s32.totalorder %v5244_v57, %v6451_v4  ;;  %v3297_v48 = vrot.slane %v4663_v47, 4 }
 0x15a   :  { %4517 = vmatpush2.msk.msra.mxu0 %vm1319_vm7, %v4756_v21  ;;  %4582 = vmatpush2.msk.msra.mxu1 %vm1385_vm8, %v4756_v21  ;;  %vm1354_vm7 = vcmp.eq.s32.totalorder %v5124_v49, %v6560_v28  ;;  %vm1287_vm8 = vcmp.eq.s32.totalorder %v5244_v57, %v6461_v14 }
 0x15b   :  { %4518 = vmatprep.subr.msk.mxu0 %vm1312_vm9, %v4756_v21  ;;  %4583 = vmatprep.subr.msk.mxu1 %vm1378_vm10, %v4756_v21  ;;  %vm1353_vm9 = vcmp.eq.s32.totalorder %v5124_v49, %v6570_v63  ;;  %vm1280_vm10 = vcmp.eq.s32.totalorder %v5259_v58, %v6451_v4  ;;  %v4664_v49 = vld [vmem:[#allocation2 + $0x30] sm:$0x1f]  ;;  %3313 = vst [vmem:[#allocation8 + $0x68] ss:$-60 sps:$4 sm:$0xc1] %v3297_v48  }
 0x15c   :  { %4519 = vmatpush2.msk.msra.mxu0 %vm1311_vm11, %v4756_v21  ;;  %4584 = vmatpush2.msk.msra.mxu1 %vm1377_vm12, %v4756_v21  ;;  %vm1346_vm11 = vcmp.eq.s32.totalorder %v5139_v50, %v6560_v28  ;;  %vm1279_vm12 = vcmp.eq.s32.totalorder %v5259_v58, %v6461_v14 }
 0x15d   :  { %4520 = vmatprep.subr.msk.mxu0 %vm1304_vm13, %v4756_v21  ;;  %4585 = vmatprep.subr.msk.mxu1 %vm1370_vm14, %v4756_v21  ;;  %vm1345_vm13 = vcmp.eq.s32.totalorder %v5139_v50, %v6570_v63  ;;  %vm1272_vm14 = vcmp.eq.s32.totalorder %v5274_v59, %v6451_v4  ;;  %v3298_v50 = vrot.slane %v4664_v49, 4 }
 0x15e   :  { %4521 = vmatpush2.msk.msra.mxu0 %vm1303_vm15, %v4756_v21  ;;  %4586 = vmatpush2.msk.msra.mxu1 %vm1369_vm0, %v4756_v21  ;;  %vm1338_vm15 = vcmp.eq.s32.totalorder %v5154_v51, %v6560_v28  ;;  %vm1271_vm0 = vcmp.eq.s32.totalorder %v5274_v59, %v6461_v14 }
 0x15f   :  { %4522 = vmatprep.subr.msk.mxu0 %vm1296_vm2, %v4756_v21  ;;  %4587 = vmatprep.subr.msk.mxu1 %vm1362_vm3, %v4756_v21  ;;  %vm1337_vm2 = vcmp.eq.s32.totalorder %v5154_v51, %v6570_v63  ;;  %vm1264_vm3 = vcmp.eq.s32.totalorder %v5289_v60, %v6451_v4  ;;  %v4665_v51 = vld [vmem:[#allocation2 + $0x38] sm:$0x1f]  ;;  %3314 = vst [vmem:[#allocation8 + $0x70] ss:$-60 sps:$4 sm:$0xc1] %v3298_v50  }
 0x160   :  { %4523 = vmatpush2.msk.msra.mxu0 %vm1295_vm4, %v4756_v21  ;;  %4588 = vmatpush2.msk.msra.mxu1 %vm1361_vm5, %v4756_v21  ;;  %vm1330_vm4 = vcmp.eq.s32.totalorder %v5169_v52, %v6560_v28  ;;  %vm1263_vm5 = vcmp.eq.s32.totalorder %v5289_v60, %v6461_v14 }
 0x161   :  { %4524 = vmatprep.subr.msk.mxu0 %vm1288_vm6, %v4756_v21  ;;  %4589 = vmatprep.subr.msk.mxu1 %vm1354_vm7, %v4756_v21  ;;  %vm1329_vm6 = vcmp.eq.s32.totalorder %v5169_v52, %v6570_v63  ;;  %vm1322_vm7 = vcmp.eq.s32.totalorder %v5184_v53, %v6560_v28  ;;  %v3299_v52 = vrot.slane %v4665_v51, 4 }
 0x162   :  { %4525 = vmatpush2.msk.msra.mxu0 %vm1287_vm8, %v4756_v21  ;;  %4590 = vmatpush2.msk.msra.mxu1 %vm1353_vm9, %v4756_v21  ;;  %vm1450_vm8 = vcmp.eq.s32.totalorder %v4801_v10, %v6560_v28  ;;  %vm1321_vm9 = vcmp.eq.s32.totalorder %v5184_v53, %v6570_v63 }
 0x163   :  { %4526 = vmatprep.subr.msk.mxu0 %vm1280_vm10, %v4756_v21  ;;  %4591 = vmatprep.subr.msk.mxu1 %vm1346_vm11, %v4756_v21  ;;  %vm1449_vm10 = vcmp.eq.s32.totalorder %v4801_v10, %v6570_v63  ;;  %vm1314_vm11 = vcmp.eq.s32.totalorder %v5199_v54, %v6560_v28  ;;  %v2521_v10 = vpop.f32.mrf.mxu1  ;;  %3315 = vst [vmem:[#allocation8 + $0x78] ss:$-60 sps:$4 sm:$0xc1] %v3299_v52  }
 0x164   :  { %4527 = vmatpush2.msk.msra.mxu0 %vm1279_vm12, %v4756_v21  ;;  %4592 = vmatpush2.msk.msra.mxu1 %vm1345_vm13, %v4756_v21  ;;  %vm1442_vm12 = vcmp.eq.s32.totalorder %v4809_v13, %v6560_v28  ;;  %vm1313_vm13 = vcmp.eq.s32.totalorder %v5199_v54, %v6570_v63 }
 0x165   :  { %4528 = vmatprep.subr.msk.mxu0 %vm1272_vm14, %v4756_v21  ;;  %4593 = vmatprep.subr.msk.mxu1 %vm1338_vm15, %v4756_v21  ;;  %vm1441_vm14 = vcmp.eq.s32.totalorder %v4809_v13, %v6570_v63  ;;  %vm1306_vm15 = vcmp.eq.s32.totalorder %v5214_v55, %v6560_v28 }
 0x166   :  { %4529 = vmatpush2.msk.msra.mxu0 %vm1271_vm0, %v4756_v21  ;;  %4594 = vmatpush2.msk.msra.mxu1 %vm1337_vm2, %v4756_v21  ;;  %vm1434_vm0 = vcmp.eq.s32.totalorder %v4823_v17, %v6560_v28  ;;  %vm1305_vm2 = vcmp.eq.s32.totalorder %v5214_v55, %v6570_v63 }
 0x167   :  { %4530 = vmatprep.subr.msk.mxu0 %vm1264_vm3, %v4756_v21  ;;  %4595 = vmatprep.subr.msk.mxu1 %vm1330_vm4, %v4756_v21  ;;  %vm1433_vm3 = vcmp.eq.s32.totalorder %v4823_v17, %v6570_v63  ;;  %vm1298_vm4 = vcmp.eq.s32.totalorder %v5229_v56, %v6560_v28 }
 0x168   :  { %4531 = vmatpush2.msk.msra.mxu0 %vm1263_vm5, %v4756_v21  ;;  %3024 = vmatprep.mubr.f32.mxu0 %v6355_v62  ;;  %vm1426_vm5 = vcmp.eq.s32.totalorder %v4829_v19, %v6560_v28 }
 0x169   :  { %4596 = vmatpush2.msk.msra.mxu1 %vm1329_vm6, %v4756_v21  ;;  %3025 = vmatmul.mubr.f32.vlgmr.msra.gmra.mxu0 %v6333_v34  ;;  %vm1297_vm6 = vcmp.eq.s32.totalorder %v5229_v56, %v6570_v63 }
 0x16a   :  { %4597 = vmatprep.subr.msk.mxu1 %vm1322_vm7, %v4756_v21  ;;  %4613 = vmatprep.subr.msk.mxu0 %vm1450_vm8, %v4756_v21  ;;  %vm1425_vm7 = vcmp.eq.s32.totalorder %v4829_v19, %v6570_v63  ;;  %vm1290_vm8 = vcmp.eq.s32.totalorder %v5244_v57, %v6560_v28  ;;  %v2523_v19 = vpop.f32.mrf.mxu1 }
 0x16b   :  { %4598 = vmatpush2.msk.msra.mxu1 %vm1321_vm9, %v4756_v21  ;;  %4614 = vmatpush1.msk.msra.mxu0 %vm1449_vm10, %v4756_v21  ;;  %vm1418_vm9 = vcmp.eq.s32.totalorder %v4859_v24, %v6560_v28  ;;  %vm1289_vm10 = vcmp.eq.s32.totalorder %v5244_v57, %v6570_v63 }
 0x16c   :  { %4599 = vmatprep.subr.msk.mxu1 %vm1314_vm11, %v4756_v21  ;;  %4615 = vmatprep.subr.msk.mxu0 %vm1442_vm12, %v4756_v21  ;;  %vm1417_vm11 = vcmp.eq.s32.totalorder %v4859_v24, %v6570_v63  ;;  %vm1282_vm12 = vcmp.eq.s32.totalorder %v5259_v58, %v6560_v28 }
 0x16d   :  { %4600 = vmatpush2.msk.msra.mxu1 %vm1313_vm13, %v4756_v21  ;;  %4616 = vmatpush1.msk.msra.mxu0 %vm1441_vm14, %v4756_v21  ;;  %vm1410_vm13 = vcmp.eq.s32.totalorder %v4877_v27, %v6560_v28  ;;  %vm1281_vm14 = vcmp.eq.s32.totalorder %v5259_v58, %v6570_v63 }
 0x16e   :  { %4601 = vmatprep.subr.msk.mxu1 %vm1306_vm15, %v4756_v21  ;;  %4617 = vmatprep.subr.msk.mxu0 %vm1434_vm0, %v4756_v21  ;;  %vm1409_vm15 = vcmp.eq.s32.totalorder %v4877_v27, %v6570_v63  ;;  %vm1274_vm0 = vcmp.eq.s32.totalorder %v5274_v59, %v6560_v28 }
 0x16f   :  { %4602 = vmatpush2.msk.msra.mxu1 %vm1305_vm2, %v4756_v21  ;;  %4618 = vmatpush1.msk.msra.mxu0 %vm1433_vm3, %v4756_v21  ;;  %vm1402_vm2 = vcmp.eq.s32.totalorder %v4895_v30, %v6560_v28  ;;  %vm1273_vm3 = vcmp.eq.s32.totalorder %v5274_v59, %v6570_v63 }
 0x170   :  { %4603 = vmatprep.subr.msk.mxu1 %vm1298_vm4, %v4756_v21  ;;  %4619 = vmatprep.subr.msk.mxu0 %vm1426_vm5, %v4756_v21  ;;  %vm1401_vm4 = vcmp.eq.s32.totalorder %v4895_v30, %v6570_v63  ;;  %vm1266_vm5 = vcmp.eq.s32.totalorder %v5289_v60, %v6560_v28 }
 0x171   :  { %4604 = vmatpush2.msk.msra.mxu1 %vm1297_vm6, %v4756_v21  ;;  %4620 = vmatpush1.msk.msra.mxu0 %vm1425_vm7, %v4756_v21  ;;  %vm1394_vm6 = vcmp.eq.s32.totalorder %v4915_v33, %v6560_v28  ;;  %vm1265_vm7 = vcmp.eq.s32.totalorder %v5289_v60, %v6570_v63 }
 0x172   :  { %4605 = vmatprep.subr.msk.mxu1 %vm1290_vm8, %v4756_v21  ;;  %4621 = vmatprep.subr.msk.mxu0 %vm1418_vm9, %v4756_v21  ;;  %vm1393_vm8 = vcmp.eq.s32.totalorder %v4915_v33, %v6570_v63  ;;  %v4658_v33 = vld [vmem:[#allocation2] sm:$0x1f] }
 0x173   :  { %4606 = vmatpush2.msk.msra.mxu1 %vm1289_vm10, %v4756_v21  ;;  %4622 = vmatpush1.msk.msra.mxu0 %vm1417_vm11, %v4756_v21  ;;  %v3292_v35 = vrot.slane %v4658_v33, 4 }
 0x174   :  { %4607 = vmatprep.subr.msk.mxu1 %vm1282_vm12, %v4756_v21  ;;  %4623 = vmatprep.subr.msk.mxu0 %vm1410_vm13, %v4756_v21 }
 0x175   :  { %4608 = vmatpush2.msk.msra.mxu1 %vm1281_vm14, %v4756_v21  ;;  %4624 = vmatpush1.msk.msra.mxu0 %vm1409_vm15, %v4756_v21  ;;  %3308 = vst [vmem:[#allocation8 + $0x40] ss:$-60 sps:$4 sm:$0xc1] %v3292_v35  }
 0x176   :  { %4609 = vmatprep.subr.msk.mxu1 %vm1274_vm0, %v4756_v21  ;;  %4625 = vmatprep.subr.msk.mxu0 %vm1402_vm2, %v4756_v21 }
 0x177   :  { %4610 = vmatpush2.msk.msra.mxu1 %vm1273_vm3, %v4756_v21  ;;  %4626 = vmatpush1.msk.msra.mxu0 %vm1401_vm4, %v4756_v21 }
 0x178   :  { %4611 = vmatprep.subr.msk.mxu1 %vm1266_vm5, %v4756_v21  ;;  %4627 = vmatprep.subr.msk.mxu0 %vm1394_vm6, %v4756_v21 }
 0x179   :  { %4612 = vmatpush2.msk.msra.mxu1 %vm1265_vm7, %v4756_v21  ;;  %3166 = vmatprep.mubr.f32.mxu1 %v6355_v62 }
 0x17a   :  { %4628 = vmatpush1.msk.msra.mxu0 %vm1393_vm8, %v4756_v21  ;;  %3237 = vmatprep.mubr.f32.mxu0 %v4755_v1 }
 0x17b   :  { %3167 = vmatmul.mubr.f32.vlgmr.msra.gmra.mxu1 %v6333_v34  ;;  %4629 = vmatmul.mubr.msk.f32.vlgmr.msra.gmra.mxu0 %vm2097_vm1, %v4657_v2 }
 0x181   :  { %v2450_v13 = vpop.f32.mrf.mxu0 }
 0x182   :  { %v2522_v17 = vadd.f32 %v2521_v10, %v2450_v13 }
 0x183   :  { %v2452_v24 = vpop.f32.mrf.mxu0 }
 0x184   :  { %3248 = vst [vmem:[#allocation8 + $0x20] sm:$0x7] %v2522_v17  ;;  %v2524_v25 = vadd.f32 %v2523_v19, %v2452_v24 }
 0x186   :  { %3249 = vst [vmem:[#allocation8 + $0x28] sm:$0x7] %v2524_v25 }
 0x193   :  { %v2592_v27 = vpop.f32.mrf.mxu1  ;;  %v2663_v29 = vpop.f32.mrf.mxu0 }
 0x194   :  { %v2664_v30 = vadd.f32 %v2663_v29, %v2592_v27 }
 0x195   :  { %v2594_v31 = vpop.f32.mrf.mxu1  ;;  %v2665_v21 = vpop.f32.mrf.mxu0 }
 0x196   :  { %3250 = vst [vmem:[#allocation8 + $0x30] sm:$0x7] %v2664_v30  ;;  %v2666_v1 = vadd.f32 %v2665_v21, %v2594_v31 }
 0x198   :  { %3251 = vst [vmem:[#allocation8 + $0x38] sm:$0x7] %v2666_v1 }
 0x1a5   :  { %v2813_v53 = vpop.f32.mrf.mxu1 }
 0x1a7   :  { %v2815_v56 = vpop.f32.mrf.mxu1 }
 0x1d5   :  { %v2742_v54 = vpop.f32.mrf.mxu0 }
 0x1d6   :  { %v2814_v55 = vadd.f32 %v2813_v53, %v2742_v54 }
 0x1d7   :  { %v2744_v57 = vpop.f32.mrf.mxu0 }
 0x1d8   :  { %v3260_v58 = vrot.slane %v2814_v55, 5  ;;  %v2816_v59 = vadd.f32 %v2815_v56, %v2744_v57 }
 0x1da   :  { %3276 = vst [vmem:[#allocation8] sm:$0x38] %v3260_v58  ;;  %v3261_v60 = vrot.slane %v2816_v59, 5 }
 0x1dc   :  { %3277 = vst [vmem:[#allocation8 + $0x8] sm:$0x38] %v3261_v60 }
 0x1e7   :  { %v2884_v37 = vpop.f32.mrf.mxu1  ;;  %v2955_v0 = vpop.f32.mrf.mxu0 }
 0x1e8   :  { %v2956_v6 = vadd.f32 %v2955_v0, %v2884_v37 }
 0x1e9   :  { %v2886_v39 = vpop.f32.mrf.mxu1  ;;  %v2957_v3 = vpop.f32.mrf.mxu0 }
 0x1ea   :  { %v3262_v8 = vrot.slane %v2956_v6, 5  ;;  %v2958_v11 = vadd.f32 %v2957_v3, %v2886_v39 }
 0x1ec   :  { %3278 = vst [vmem:[#allocation8 + $0x10] sm:$0x38] %v3262_v8  ;;  %v3263_v61 = vrot.slane %v2958_v11, 5 }
 0x1ee   :  { %3279 = vst [vmem:[#allocation8 + $0x18] sm:$0x38] %v3263_v61 }
 0x1f9   :  { %v3097_v32 = vpop.f32.mrf.mxu1 }
 0x1fb   :  { %v3099_v4 = vpop.f32.mrf.mxu1 }
 0x229   :  { %v3026_v34 = vpop.f32.mrf.mxu0 }
 0x22a   :  { %v3098_v62 = vadd.f32 %v3097_v32, %v3026_v34 }
 0x22b   :  { %v3028_v14 = vpop.f32.mrf.mxu0 }
 0x22c   :  { %v3264_v5 = vrot.slane %v3098_v62, 5  ;;  %v3100_v7 = vadd.f32 %v3099_v4, %v3028_v14 }
 0x22e   :  { %3280 = vst [vmem:[#allocation8 + $0x20] sm:$0x38] %v3264_v5  ;;  %v3265_v15 = vrot.slane %v3100_v7, 5 }
 0x230   :  { %3281 = vst [vmem:[#allocation8 + $0x28] sm:$0x38] %v3265_v15 }
 0x23b   :  { %v3168_v20 = vpop.f32.mrf.mxu1  ;;  %v3239_v23 = vpop.f32.mrf.mxu0 }
 0x23c   :  { %v3240_v26 = vadd.f32 %v3239_v23, %v3168_v20 }
 0x23d   :  { %v3170_v28 = vpop.f32.mrf.mxu1  ;;  %v3241_v63 = vpop.f32.mrf.mxu0 }
 0x23e   :  { %v3266_v9 = vrot.slane %v3240_v26, 5  ;;  %v3242_v12 = vadd.f32 %v3241_v63, %v3170_v28 }
 0x240   :  { %3282 = vst [vmem:[#allocation8 + $0x30] sm:$0x38] %v3266_v9  ;;  %v3267_v16 = vrot.slane %v3242_v12, 5 }
 0x242   :  { %3283 = vst [vmem:[#allocation8 + $0x38] sm:$0x38] %v3267_v16 }
 0x243   :  { %4737 = shalt.err (!%p4734_p5)
}
 0x244   :  { %s4758_s27 = smov 1024   ;;  %s4759_s28 = smov 64  }
 0x245   :  { %3335 = dma.vmem_to_hbm [thread:$0]  %s3330_s2, 2048, %s6980_s3, [#allocation4], %s4758_s27, %s4758_s27, %s4759_s28  }
 0x246   :  { %4750 = dma.done.wait [#allocation4], 2048  }
 0x247   :  { %4751 = vsyncadd [#allocation4], 4294965248 }
 0x248   :  { %3339 = vsyncpa [#allocation3], 1 }
 0x249   :  { %3340 = vsyncpa [#allocation6], 1 }
 0x24a   :  { %3341 = vsyncpa [#allocation4], 1 }

</bundles_post_ra>
